<compile_context>
chip_gen: v6e
topology: v6e:2x2x1
jax: 0.10.0
libtpu: 0.0.40
codegen_flags: <defaults>
</compile_context>

<pallas_src>
import functools

import jax
import jax.numpy as jnp
from jax.experimental import pallas as pl
from jax.experimental.pallas import tpu as pltpu


def _round_up(x, m):
    return ((x + m - 1) // m) * m


def _cdiv(a, b):
    return -(-a // b)


def _vmem_budget():
    """Per-core VMEM budget in bytes, derived from the device when possible."""
    cap = 64 * 1024 * 1024                      # conservative fallback (v7x)
    try:
        info = pltpu.get_tpu_info()
        cap = int(getattr(info, "vmem_capacity_bytes", cap))
    except Exception:
        pass
    return int(min(cap * 0.7, 96 * 1024 * 1024))


def _conv_prelu_kernel(xc_ref, xh_ref, w_ref, b_ref, a_ref, o_ref,
                       *, TH, Wt, KH, KW):
    """One (batch, row-block) tile per grid step.

    xc_ref: (1, TH, Wp8, Cink)   bf16  current padded input rows
    xh_ref: (1, KHm1, Wp8, Cink) bf16  bottom halo rows (start of next block)
    w_ref:  (KH*KW, Cink, Coutp) bf16  per-tap weight-normed weights
    b_ref:  (1, Coutp)           f32   bias
    a_ref:  (1,)                 f32   PReLU alpha (SMEM scalar path)
    o_ref:  (1, TH*Wt, Coutp)    f32   flat (lane-dense) output block
    """
    cink = xc_ref.shape[-1]
    coutp = w_ref.shape[-1]
    wp8 = xc_ref.shape[2]
    khm1 = xh_ref.shape[1]
    the = TH + khm1

    # Halo-extended block, kept flat: TH % 8 == 0 and Wp8 % 8 == 0 keep the
    # concat and every (rows, W) <-> flat reshape below tile-aligned.
    x_flat = jnp.concatenate(
        [xc_ref[0].reshape(TH * wp8, cink),
         xh_ref[0].reshape(khm1 * wp8, cink)], axis=0)      # (the*wp8, cink)

    acc = jnp.zeros((TH * Wt, coutp), jnp.float32)
    for j in range(KW):
        # One whole-block row shift per kernel column (instead of one
        # unaligned slice + merging reshape per tap).  The wrapped tail of
        # the shifted block is never read.
        # TODO(synk): switch to pltpu.roll(x_flat, the*wp8 - j, axis=0) once
        # packed-bf16 sublane rotates are verified on all target generations.
        if j == 0:
            xj = x_flat
        else:
            xj = jnp.concatenate([x_flat[j:], x_flat[:j]], axis=0)
        x3 = xj.reshape(the, wp8, cink)
        for i in range(KH):
            # Aligned slices (leading-dim offset i, width prefix :Wt) and a
            # layout-preserving reshape -> no per-tap relayout.
            xt = x3[i:i + TH, :Wt, :].reshape(TH * Wt, cink)
            acc = acc + jnp.dot(xt, w_ref[i * KW + j],
                                preferred_element_type=jnp.float32)

    # f32 epilogue: bias + PReLU (single alpha from the scalar path).
    acc = acc + b_ref[...]
    alpha = a_ref[0]
    acc = jnp.where(acc > 0, acc, alpha * acc)
    # TODO(synk): store bf16 here if the consumer accepts bf16 activations.
    o_ref[0] = acc.astype(o_ref.dtype)


def conv_layer_forward(x_nchw, v, g, bias, alpha, *, row_block=8):
    """ConvLayer forward.

    x_nchw: (N, Cin, H, W) float32
    v:      (Cout, Cin, KH, KW)  weight_norm direction
    g:      (Cout,)              weight_norm magnitude
    bias:   (Cout,)
    alpha:  scalar PReLU parameter
    Returns (N, Cout, H, W) float32.
    """
    N, Cin, H, W = x_nchw.shape
    Cout, _, KH, KW = v.shape
    # PyTorch padding = kernel//2 only preserves H, W for odd kernel sizes.
    assert KH % 2 == 1 and KW % 2 == 1, "only odd kernel sizes supported"
    ph, pw = KH // 2, KW // 2
    khm1 = max(KH - 1, 1)

    # ---- layout / tiling parameters -------------------------------------
    Cink = _round_up(Cin, 8)           # small multiple-of-8 pad, NOT 128/tap
    Coutp = _round_up(Cout, 128)       # lane-dense output channels
    # TODO(synk): round Coutp to 256 on v6e/v7x when Cout > 128 (256-wide MXU).
    Wt = _round_up(W, 8)               # per-block output width (tile aligned)
    Wp8 = _round_up(Wt + KW - 1, 8)    # padded input width incl. halo columns

    def est_vmem(th):
        blk_in = th * Wp8 * Cink * 2
        blk_halo = khm1 * Wp8 * Cink * 2
        blk_w = KH * KW * Cink * Coutp * 2
        blk_out = th * Wt * Coutp * 4
        acc = th * Wt * Coutp * 4
        tmp = 2 * (th + khm1) * Wp8 * Cink * 2
        return 2 * (blk_in + blk_halo + blk_w + blk_out) + acc + tmp

    budget = _vmem_budget()
    TH = _round_up(max(row_block, 8), 8)
    while TH > 8 and est_vmem(TH) > budget:          # shrink to fit VMEM
        TH -= 8
    Hcap = _round_up(H, 8)
    # Grow TH while there is ample VMEM headroom (fewer grid steps, better
    # DMA amortization); keep >= 2 grid steps so both v7x cores get work.
    while (TH * 2 <= min(Hcap, 64) and est_vmem(TH * 2) <= budget // 2
           and (N >= 2 or _cdiv(H, TH * 2) >= 2)):
        TH *= 2
    assert khm1 <= TH
    num_h = _cdiv(H, TH)
    vmem_limit = int(min(max(budget, int(est_vmem(TH) * 1.25)),
                         100 * 1024 * 1024))

    # ---- glue (plain JAX): weight norm, layouts, padding, bf16 casts -----
    v32 = v.astype(jnp.float32)
    norm = jnp.sqrt(jnp.sum(v32 * v32, axis=(1, 2, 3)))
    w_oihw = (g.astype(jnp.float32) / norm)[:, None, None, None] * v32
    w_hwio = jnp.transpose(w_oihw, (2, 3, 1, 0))          # (KH, KW, Cin, Cout)
    w_hwio = jnp.pad(w_hwio, ((0, 0), (0, 0),
                              (0, Cink - Cin), (0, Coutp - Cout)))
    w_taps = w_hwio.reshape(KH * KW, Cink, Coutp).astype(jnp.bfloat16)

    bias_row = jnp.pad(bias.astype(jnp.float32),
                       (0, Coutp - Cout)).reshape(1, Coutp)
    alpha1 = jnp.asarray(alpha, jnp.float32).reshape(1)

    # Input: bf16 cast FIRST (halves the transpose/pad HBM pass), then
    # NCHW -> NHWC, pad rows / halo columns / channels.
    x_nhwc = jnp.transpose(x_nchw.astype(jnp.bfloat16), (0, 2, 3, 1))
    rows_total = (num_h + 1) * TH
    x_pad = jnp.pad(
        x_nhwc,
        ((0, 0), (ph, rows_total - H - ph), (pw, Wp8 - W - pw),
         (0, Cink - Cin)))
    # Bottom halo rows of each block = first KH-1 rows of the next block.
    x_halo = (x_pad[:, TH:]
              .reshape(N, num_h, TH, Wp8, Cink)[:, :, :khm1]
              .reshape(N * num_h, khm1, Wp8, Cink))

    kernel = functools.partial(_conv_prelu_kernel, TH=TH, Wt=Wt, KH=KH, KW=KW)

    out = pl.pallas_call(
        kernel,
        out_shape=jax.ShapeDtypeStruct((N, num_h * TH * Wt, Coutp),
                                       jnp.float32),
        grid=(N, num_h),
        in_specs=[
            # current TH padded input rows
            pl.BlockSpec((1, TH, Wp8, Cink), lambda n, h: (n, h, 0, 0)),
            # small halo slab (KH-1 rows) instead of a duplicate full block
            pl.BlockSpec((1, khm1, Wp8, Cink),
                         lambda n, h: (n * num_h + h, 0, 0, 0)),
            # weights: resident (constant index map -> fetched once)
            # TODO(synk): pipeline_mode=pl.Buffered(1) to single-buffer the
            # resident weights once verified (frees a dead VMEM copy on v7x).
            pl.BlockSpec((KH * KW, Cink, Coutp), lambda n, h: (0, 0, 0)),
            # bias row
            pl.BlockSpec((1, Coutp), lambda n, h: (0, 0)),
            # PReLU alpha on the scalar path
            pl.BlockSpec(memory_space=pltpu.MemorySpace.SMEM),
        ],
        out_specs=pl.BlockSpec((1, TH * Wt, Coutp), lambda n, h: (n, h, 0)),
        compiler_params=pltpu.CompilerParams(
            dimension_semantics=("parallel", "parallel"),
            vmem_limit_bytes=vmem_limit),
    )(x_pad, x_halo, w_taps, bias_row, alpha1)

    out = out.reshape(N, num_h * TH, Wt, Coutp)[:, :H, :W, :Cout]
    return jnp.transpose(out, (0, 3, 1, 2))               # NHWC -> NCHW


def _xavier_uniform(key, shape):
    # torch xavier_uniform_ for conv weight (Cout, Cin, KH, KW)
    cout, cin, kh, kw = shape
    fan_in = cin * kh * kw
    fan_out = cout * kh * kw
    limit = jnp.sqrt(6.0 / (fan_in + fan_out))
    return jax.random.uniform(key, shape, jnp.float32, -limit, limit)


if __name__ == "__main__":
    key = jax.random.PRNGKey(0)
    k_x, k_v, k_b = jax.random.split(key, 3)

    N, Cin, H, W = 2, 4, 16, 16
    Cout, KH, KW = 8, 3, 3

    x = jax.random.normal(k_x, (N, Cin, H, W), jnp.float32)

    # weight_norm parametrization: v (direction), g initialized to ||v||.
    v = _xavier_uniform(k_v, (Cout, Cin, KH, KW))
    g = jnp.sqrt(jnp.sum(v ** 2, axis=(1, 2, 3)))
    # Conv2d default bias init: U(-1/sqrt(fan_in), 1/sqrt(fan_in))
    bound = 1.0 / jnp.sqrt(jnp.float32(Cin * KH * KW))
    bias = jax.random.uniform(k_b, (Cout,), jnp.float32, -bound, bound)
    alpha = jnp.float32(0.25)          # PReLU default single parameter

    out = conv_layer_forward(x, v, g, bias, alpha)
    out = jax.block_until_ready(out)

    # Reference: identical bf16-quantized x / normalized weights, f32 math.
    w = (g / jnp.sqrt(jnp.sum(v ** 2, axis=(1, 2, 3))))[:, None, None, None] * v
    xb = x.astype(jnp.bfloat16).astype(jnp.float32)
    wb = w.astype(jnp.bfloat16).astype(jnp.float32)
    ref = jax.lax.conv_general_dilated(
        xb, wb, window_strides=(1, 1),
        padding=((KH // 2,) * 2, (KW // 2,) * 2),
        dimension_numbers=("NCHW", "OIHW", "NCHW"),
        precision=jax.lax.Precision.HIGHEST)
    ref = ref + bias[None, :, None, None]
    ref = jnp.where(ref > 0, ref, alpha * ref)

    assert out.shape == (N, Cout, H, W), out.shape
    err = float(jnp.max(jnp.abs(out - ref)))
    assert err < 2e-3, f"max abs err {err}"

    print("KERNEL_OK")
</pallas_src>

<mosaic_0001>
module attributes {stable_mosaic.version = 11 : i64} {
  func.func @_conv_prelu_kernel(%arg0: i32, %arg1: i32, %arg2: memref<1x16x24x8xbf16, #tpu.memory_space<vmem>>, %arg3: memref<1x2x24x8xbf16, #tpu.memory_space<vmem>>, %arg4: memref<9x8x128xbf16, #tpu.memory_space<vmem>>, %arg5: memref<1x128xf32, #tpu.memory_space<vmem>>, %arg6: memref<1xf32, #tpu.memory_space<smem>>, %arg7: memref<1x256x128xf32, #tpu.memory_space<vmem>>) attributes {dimension_semantics = [#tpu.dimension_semantics<parallel>, #tpu.dimension_semantics<parallel>], iteration_bounds = array<i64: 2, 1>, scalar_prefetch = 0 : i64, scratch_operands = 0 : i64, tpu.core_type = #tpu.core_type<tc>, window_params = [{transform_indices = @transform_0, window_bounds = array<i64: 1, 16, 24, 8>}, {transform_indices = @transform_1, window_bounds = array<i64: 1, 2, 24, 8>}, {pipeline_mode = #tpu.pipeline_mode<synchronous>, transform_indices = @transform_2, window_bounds = array<i64: 9, 8, 128>}, {pipeline_mode = #tpu.pipeline_mode<synchronous>, transform_indices = @transform_3, window_bounds = array<i64: 1, 128>}, {transform_indices = @transform_4, window_bounds = array<i64: 1>}, {transform_indices = @transform_5, window_bounds = array<i64: 1, 256, 128>}]} {
    %c0 = arith.constant 0 : index
    %c0_0 = arith.constant 0 : index
    %c0_1 = arith.constant 0 : index
    %c0_2 = arith.constant 0 : index
    %0 = vector.load %arg2[%c0, %c0_0, %c0_1, %c0_2] : memref<1x16x24x8xbf16, #tpu.memory_space<vmem>>, vector<1x16x24x8xbf16>
    %1 = vector.shape_cast %0 : vector<1x16x24x8xbf16> to vector<16x24x8xbf16>
    %2 = vector.shape_cast %1 : vector<16x24x8xbf16> to vector<384x8xbf16>
    %c0_3 = arith.constant 0 : index
    %c0_4 = arith.constant 0 : index
    %c0_5 = arith.constant 0 : index
    %c0_6 = arith.constant 0 : index
    %3 = vector.load %arg3[%c0_3, %c0_4, %c0_5, %c0_6] : memref<1x2x24x8xbf16, #tpu.memory_space<vmem>>, vector<1x2x24x8xbf16>
    %4 = vector.shape_cast %3 : vector<1x2x24x8xbf16> to vector<2x24x8xbf16>
    %5 = vector.shape_cast %4 : vector<2x24x8xbf16> to vector<48x8xbf16>
    %6 = tpu.concatenate %2, %5 in 0 : vector<384x8xbf16>, vector<48x8xbf16> -> vector<432x8xbf16>
    %cst = arith.constant 0.000000e+00 : f32
    %7 = vector.broadcast %cst : f32 to vector<256x128xf32>
    %8 = vector.shape_cast %6 : vector<432x8xbf16> to vector<18x24x8xbf16>
    %9 = vector.extract_strided_slice %8 {offsets = [0, 0, 0], sizes = [16, 16, 8], strides = [1, 1, 1]} : vector<18x24x8xbf16> to vector<16x16x8xbf16>
    %10 = vector.shape_cast %9 : vector<16x16x8xbf16> to vector<256x8xbf16>
    %c0_7 = arith.constant 0 : index
    %c0_8 = arith.constant 0 : index
    %c0_9 = arith.constant 0 : index
    %11 = vector.load %arg4[%c0_7, %c0_8, %c0_9] : memref<9x8x128xbf16, #tpu.memory_space<vmem>>, vector<1x8x128xbf16>
    %12 = vector.shape_cast %11 : vector<1x8x128xbf16> to vector<8x128xbf16>
    %cst_10 = arith.constant dense<0.000000e+00> : vector<256x128xf32>
    %13 = tpu.matmul %10, %12, %cst_10 {dimension_numbers = #tpu.dot_dimension_numbers<[1], [0], [0], [1], [0, 0, 1, 1], [], []>} : vector<256x8xbf16>, vector<8x128xbf16>, vector<256x128xf32> -> vector<256x128xf32>
    %14 = arith.addf %7, %13 : vector<256x128xf32>
    %15 = vector.extract_strided_slice %8 {offsets = [1, 0, 0], sizes = [16, 16, 8], strides = [1, 1, 1]} : vector<18x24x8xbf16> to vector<16x16x8xbf16>
    %16 = vector.shape_cast %15 : vector<16x16x8xbf16> to vector<256x8xbf16>
    %c3 = arith.constant 3 : index
    %c0_11 = arith.constant 0 : index
    %c0_12 = arith.constant 0 : index
    %17 = vector.load %arg4[%c3, %c0_11, %c0_12] : memref<9x8x128xbf16, #tpu.memory_space<vmem>>, vector<1x8x128xbf16>
    %18 = vector.shape_cast %17 : vector<1x8x128xbf16> to vector<8x128xbf16>
    %cst_13 = arith.constant dense<0.000000e+00> : vector<256x128xf32>
    %19 = tpu.matmul %16, %18, %cst_13 {dimension_numbers = #tpu.dot_dimension_numbers<[1], [0], [0], [1], [0, 0, 1, 1], [], []>} : vector<256x8xbf16>, vector<8x128xbf16>, vector<256x128xf32> -> vector<256x128xf32>
    %20 = arith.addf %14, %19 : vector<256x128xf32>
    %21 = vector.extract_strided_slice %8 {offsets = [2, 0, 0], sizes = [16, 16, 8], strides = [1, 1, 1]} : vector<18x24x8xbf16> to vector<16x16x8xbf16>
    %22 = vector.shape_cast %21 : vector<16x16x8xbf16> to vector<256x8xbf16>
    %c6 = arith.constant 6 : index
    %c0_14 = arith.constant 0 : index
    %c0_15 = arith.constant 0 : index
    %23 = vector.load %arg4[%c6, %c0_14, %c0_15] : memref<9x8x128xbf16, #tpu.memory_space<vmem>>, vector<1x8x128xbf16>
    %24 = vector.shape_cast %23 : vector<1x8x128xbf16> to vector<8x128xbf16>
    %cst_16 = arith.constant dense<0.000000e+00> : vector<256x128xf32>
    %25 = tpu.matmul %22, %24, %cst_16 {dimension_numbers = #tpu.dot_dimension_numbers<[1], [0], [0], [1], [0, 0, 1, 1], [], []>} : vector<256x8xbf16>, vector<8x128xbf16>, vector<256x128xf32> -> vector<256x128xf32>
    %26 = arith.addf %20, %25 : vector<256x128xf32>
    %27 = vector.extract_strided_slice %6 {offsets = [1, 0], sizes = [431, 8], strides = [1, 1]} : vector<432x8xbf16> to vector<431x8xbf16>
    %28 = vector.extract_strided_slice %6 {offsets = [0, 0], sizes = [1, 8], strides = [1, 1]} : vector<432x8xbf16> to vector<1x8xbf16>
    %29 = tpu.concatenate %27, %28 in 0 : vector<431x8xbf16>, vector<1x8xbf16> -> vector<432x8xbf16>
    %30 = vector.shape_cast %29 : vector<432x8xbf16> to vector<18x24x8xbf16>
    %31 = vector.extract_strided_slice %30 {offsets = [0, 0, 0], sizes = [16, 16, 8], strides = [1, 1, 1]} : vector<18x24x8xbf16> to vector<16x16x8xbf16>
    %32 = vector.shape_cast %31 : vector<16x16x8xbf16> to vector<256x8xbf16>
    %c1 = arith.constant 1 : index
    %c0_17 = arith.constant 0 : index
    %c0_18 = arith.constant 0 : index
    %33 = vector.load %arg4[%c1, %c0_17, %c0_18] : memref<9x8x128xbf16, #tpu.memory_space<vmem>>, vector<1x8x128xbf16>
    %34 = vector.shape_cast %33 : vector<1x8x128xbf16> to vector<8x128xbf16>
    %cst_19 = arith.constant dense<0.000000e+00> : vector<256x128xf32>
    %35 = tpu.matmul %32, %34, %cst_19 {dimension_numbers = #tpu.dot_dimension_numbers<[1], [0], [0], [1], [0, 0, 1, 1], [], []>} : vector<256x8xbf16>, vector<8x128xbf16>, vector<256x128xf32> -> vector<256x128xf32>
    %36 = arith.addf %26, %35 : vector<256x128xf32>
    %37 = vector.extract_strided_slice %30 {offsets = [1, 0, 0], sizes = [16, 16, 8], strides = [1, 1, 1]} : vector<18x24x8xbf16> to vector<16x16x8xbf16>
    %38 = vector.shape_cast %37 : vector<16x16x8xbf16> to vector<256x8xbf16>
    %c4 = arith.constant 4 : index
    %c0_20 = arith.constant 0 : index
    %c0_21 = arith.constant 0 : index
    %39 = vector.load %arg4[%c4, %c0_20, %c0_21] : memref<9x8x128xbf16, #tpu.memory_space<vmem>>, vector<1x8x128xbf16>
    %40 = vector.shape_cast %39 : vector<1x8x128xbf16> to vector<8x128xbf16>
    %cst_22 = arith.constant dense<0.000000e+00> : vector<256x128xf32>
    %41 = tpu.matmul %38, %40, %cst_22 {dimension_numbers = #tpu.dot_dimension_numbers<[1], [0], [0], [1], [0, 0, 1, 1], [], []>} : vector<256x8xbf16>, vector<8x128xbf16>, vector<256x128xf32> -> vector<256x128xf32>
    %42 = arith.addf %36, %41 : vector<256x128xf32>
    %43 = vector.extract_strided_slice %30 {offsets = [2, 0, 0], sizes = [16, 16, 8], strides = [1, 1, 1]} : vector<18x24x8xbf16> to vector<16x16x8xbf16>
    %44 = vector.shape_cast %43 : vector<16x16x8xbf16> to vector<256x8xbf16>
    %c7 = arith.constant 7 : index
    %c0_23 = arith.constant 0 : index
    %c0_24 = arith.constant 0 : index
    %45 = vector.load %arg4[%c7, %c0_23, %c0_24] : memref<9x8x128xbf16, #tpu.memory_space<vmem>>, vector<1x8x128xbf16>
    %46 = vector.shape_cast %45 : vector<1x8x128xbf16> to vector<8x128xbf16>
    %cst_25 = arith.constant dense<0.000000e+00> : vector<256x128xf32>
    %47 = tpu.matmul %44, %46, %cst_25 {dimension_numbers = #tpu.dot_dimension_numbers<[1], [0], [0], [1], [0, 0, 1, 1], [], []>} : vector<256x8xbf16>, vector<8x128xbf16>, vector<256x128xf32> -> vector<256x128xf32>
    %48 = arith.addf %42, %47 : vector<256x128xf32>
    %49 = vector.extract_strided_slice %6 {offsets = [2, 0], sizes = [430, 8], strides = [1, 1]} : vector<432x8xbf16> to vector<430x8xbf16>
    %50 = vector.extract_strided_slice %6 {offsets = [0, 0], sizes = [2, 8], strides = [1, 1]} : vector<432x8xbf16> to vector<2x8xbf16>
    %51 = tpu.concatenate %49, %50 in 0 : vector<430x8xbf16>, vector<2x8xbf16> -> vector<432x8xbf16>
    %52 = vector.shape_cast %51 : vector<432x8xbf16> to vector<18x24x8xbf16>
    %53 = vector.extract_strided_slice %52 {offsets = [0, 0, 0], sizes = [16, 16, 8], strides = [1, 1, 1]} : vector<18x24x8xbf16> to vector<16x16x8xbf16>
    %54 = vector.shape_cast %53 : vector<16x16x8xbf16> to vector<256x8xbf16>
    %c2 = arith.constant 2 : index
    %c0_26 = arith.constant 0 : index
    %c0_27 = arith.constant 0 : index
    %55 = vector.load %arg4[%c2, %c0_26, %c0_27] : memref<9x8x128xbf16, #tpu.memory_space<vmem>>, vector<1x8x128xbf16>
    %56 = vector.shape_cast %55 : vector<1x8x128xbf16> to vector<8x128xbf16>
    %cst_28 = arith.constant dense<0.000000e+00> : vector<256x128xf32>
    %57 = tpu.matmul %54, %56, %cst_28 {dimension_numbers = #tpu.dot_dimension_numbers<[1], [0], [0], [1], [0, 0, 1, 1], [], []>} : vector<256x8xbf16>, vector<8x128xbf16>, vector<256x128xf32> -> vector<256x128xf32>
    %58 = arith.addf %48, %57 : vector<256x128xf32>
    %59 = vector.extract_strided_slice %52 {offsets = [1, 0, 0], sizes = [16, 16, 8], strides = [1, 1, 1]} : vector<18x24x8xbf16> to vector<16x16x8xbf16>
    %60 = vector.shape_cast %59 : vector<16x16x8xbf16> to vector<256x8xbf16>
    %c5 = arith.constant 5 : index
    %c0_29 = arith.constant 0 : index
    %c0_30 = arith.constant 0 : index
    %61 = vector.load %arg4[%c5, %c0_29, %c0_30] : memref<9x8x128xbf16, #tpu.memory_space<vmem>>, vector<1x8x128xbf16>
    %62 = vector.shape_cast %61 : vector<1x8x128xbf16> to vector<8x128xbf16>
    %cst_31 = arith.constant dense<0.000000e+00> : vector<256x128xf32>
    %63 = tpu.matmul %60, %62, %cst_31 {dimension_numbers = #tpu.dot_dimension_numbers<[1], [0], [0], [1], [0, 0, 1, 1], [], []>} : vector<256x8xbf16>, vector<8x128xbf16>, vector<256x128xf32> -> vector<256x128xf32>
    %64 = arith.addf %58, %63 : vector<256x128xf32>
    %65 = vector.extract_strided_slice %52 {offsets = [2, 0, 0], sizes = [16, 16, 8], strides = [1, 1, 1]} : vector<18x24x8xbf16> to vector<16x16x8xbf16>
    %66 = vector.shape_cast %65 : vector<16x16x8xbf16> to vector<256x8xbf16>
    %c8 = arith.constant 8 : index
    %c0_32 = arith.constant 0 : index
    %c0_33 = arith.constant 0 : index
    %67 = vector.load %arg4[%c8, %c0_32, %c0_33] : memref<9x8x128xbf16, #tpu.memory_space<vmem>>, vector<1x8x128xbf16>
    %68 = vector.shape_cast %67 : vector<1x8x128xbf16> to vector<8x128xbf16>
    %cst_34 = arith.constant dense<0.000000e+00> : vector<256x128xf32>
    %69 = tpu.matmul %66, %68, %cst_34 {dimension_numbers = #tpu.dot_dimension_numbers<[1], [0], [0], [1], [0, 0, 1, 1], [], []>} : vector<256x8xbf16>, vector<8x128xbf16>, vector<256x128xf32> -> vector<256x128xf32>
    %70 = arith.addf %64, %69 : vector<256x128xf32>
    %c0_35 = arith.constant 0 : index
    %c0_36 = arith.constant 0 : index
    %71 = vector.load %arg5[%c0_35, %c0_36] : memref<1x128xf32, #tpu.memory_space<vmem>>, vector<1x128xf32>
    %72 = vector.broadcast %71 : vector<1x128xf32> to vector<256x128xf32>
    %73 = arith.addf %70, %72 : vector<256x128xf32>
    %c0_37 = arith.constant 0 : index
    %74 = memref.load %arg6[%c0_37] : memref<1xf32, #tpu.memory_space<smem>>
    %cst_38 = arith.constant 0.000000e+00 : f32
    %75 = vector.broadcast %cst_38 : f32 to vector<256x128xf32>
    %76 = arith.cmpf ogt, %73, %75 : vector<256x128xf32>
    %77 = vector.broadcast %74 : f32 to vector<256x128xf32>
    %78 = arith.mulf %77, %73 : vector<256x128xf32>
    %79 = arith.select %76, %73, %78 : vector<256x128xi1>, vector<256x128xf32>
    %c0_39 = arith.constant 0 : index
    %c0_40 = arith.constant 0 : index
    %c0_41 = arith.constant 0 : index
    %80 = vector.load %arg7[%c0_39, %c0_40, %c0_41] : memref<1x256x128xf32, #tpu.memory_space<vmem>>, vector<1x256x128xf32>
    %81 = vector.shape_cast %80 : vector<1x256x128xf32> to vector<256x128xf32>
    %82 = vector.shape_cast %79 : vector<256x128xf32> to vector<1x256x128xf32>
    tpu.vector_store %arg7[%c0_39, %c0_40, %c0_41], %82 {strides = array<i32>} : memref<1x256x128xf32, #tpu.memory_space<vmem>>, vector<1x256x128xf32>,
    return
  }
  func.func @transform_0(%arg0: i32, %arg1: i32) -> (i32, i32, i32, i32) {
    %c0_i32 = arith.constant 0 : i32
    %c0_i32_0 = arith.constant 0 : i32
    %c0_i32_1 = arith.constant 0 : i32
    return %arg0, %arg1, %c0_i32, %c0_i32_0 : i32, i32, i32, i32
  }
  func.func @transform_1(%arg0: i32, %arg1: i32) -> (i32, i32, i32, i32) {
    %c1_i32 = arith.constant 1 : i32
    %0 = arith.muli %arg0, %c1_i32 : i32
    %1 = arith.addi %0, %arg1 : i32
    %c0_i32 = arith.constant 0 : i32
    %c0_i32_0 = arith.constant 0 : i32
    %c0_i32_1 = arith.constant 0 : i32
    %c0_i32_2 = arith.constant 0 : i32
    return %1, %c0_i32, %c0_i32_0, %c0_i32_1 : i32, i32, i32, i32
  }
  func.func @transform_2(%arg0: i32, %arg1: i32) -> (i32, i32, i32) {
    %c0_i32 = arith.constant 0 : i32
    %c0_i32_0 = arith.constant 0 : i32
    %c0_i32_1 = arith.constant 0 : i32
    %c0_i32_2 = arith.constant 0 : i32
    return %c0_i32, %c0_i32_0, %c0_i32_1 : i32, i32, i32
  }
  func.func @transform_3(%arg0: i32, %arg1: i32) -> (i32, i32) {
    %c0_i32 = arith.constant 0 : i32
    %c0_i32_0 = arith.constant 0 : i32
    %c0_i32_1 = arith.constant 0 : i32
    return %c0_i32, %c0_i32_0 : i32, i32
  }
  func.func @transform_4(%arg0: i32, %arg1: i32) -> i32 {
    %c0_i32 = arith.constant 0 : i32
    %c0_i32_0 = arith.constant 0 : i32
    return %c0_i32 : i32
  }
  func.func @transform_5(%arg0: i32, %arg1: i32) -> (i32, i32, i32) {
    %c0_i32 = arith.constant 0 : i32
    %c0_i32_0 = arith.constant 0 : i32
    return %arg0, %arg1, %c0_i32 : i32, i32, i32
  }
}

</mosaic_0001>

<bundles_post_ra>
// kernel: tpu_custom_call.1
= control target key start
LH: loop header
LB: loop body
LE: loop exit
PB: predicated region body
PF: predicated region fallthrough
CT: control target
= control target key end

     0   :  { %s5355_s0 = inlined_call_operand.vmem [shape: bf16[2,32,24,8], index: 0, kind: input, shape index: {}]   ;;  %s5356_s1 = inlined_call_operand.vmem [shape: bf16[2,2,24,8], index: 1, kind: input, shape index: {}]   ;;  %s5357_s2 = inlined_call_operand.vmem [shape: bf16[9,8,128], index: 2, kind: input, shape index: {}]   ;;  %s5358_s3 = inlined_call_operand.vmem [shape: f32[1,128], index: 3, kind: input, shape index: {}]   ;;  %s5359_s4 = inlined_call_operand.<no memory space> [shape: f32[1], index: 4, kind: input, shape index: {}]   ;;  %s5360_s5 = inlined_call_operand.hbm [shape: f32[2,256,128], index: 5, kind: output, shape index: {}]  }
   0x1   :  { %10 = sst [smem:[#allocation2]] %s5359_s4 }
   0x2   :  { %11 = vsyncpa [#allocation4], 0 }
   0x3   :  { %13 = vsyncpa [#allocation4 + $0x1], 0  ;;  %s3907_s20 = smov 0   ;;  %s3909_s21 = smov 0  }
   0x4   :  { %s3911_s22 = smov 0   ;;  %s3913_s23 = smov 0  }
   0x5   :  { %s3915_s24 = smov 0   ;;  %s3917_s25 = smov 0  }
   0x6 LB: > { %s3024_s4 = sadd.s32 4294967295, %s3869_s25   ;;  %s3025_s26 = sadd.s32 4294967294, %s3869_s25   ;;  %s3869_s25 = sphi %s3917_s25, %s19_s25   ;;  %s3865_s24 = sphi %s3915_s24, %s5491_s24   ;;  %s3861_s23 = sphi %s3913_s23, %s5490_s23   ;;  %s3857_s22 = sphi %s3911_s22, %s5489_s22   ;;  %s3853_s21 = sphi %s3909_s21, %s5488_s21   ;;  %s3849_s20 = sphi %s3907_s20, %s5487_s20  }
   0x7   : > { %s31_s27 = sadd.s32 1, %s3865_s24  ;;  %s159_s28 = sadd.s32 1, %s3857_s22 }
   0x8   : > { %p33_p0 = scmp.ge.s32.totalorder %s31_s27, 2  ;;  %p169_p1 = scmp.ne.s32.totalorder %s3857_s22, %s3853_s21 }
   0x9   : > { %p170_p2 = scmp.eq.s32.totalorder %s3024_s4, 1  ;;  %p175_p3 = scmp.ne.s32.totalorder %s3853_s21, %s3849_s20 }
   0xa   : > { %s5493_s27 = smov (%p33_p0, %s31_s27), 0  ;;  %p176_p5 = scmp.eq.s32.totalorder %s3025_s26, 1 }
   0xb   : > { %p3947_p4 = por %p170_p2, %p169_p1  ;;  %s154_s30 = ssub.s32 %s3865_s24, %s5493_s27 }
   0xc   : > { %p3028_p6 = scmp.ge.s32.totalorder %s3869_s25, 1  ;;  %p157_p7 = scmp.eq.s32.totalorder %s154_s30, 0 }
   0xd   : > { %p3954_p8 = por %p176_p5, %p175_p3  ;;  %p227_p9 = scmp.lt.s32.totalorder %s3869_s25, 3 }
   0xe   : > { %s3960_s7 = scalar_select %p157_p7, %s3857_s22, %s159_s28  }
   0xf   : > { %p228_p10 = pnand %p3028_p6, %p227_p9 }
  0x11   : > { %231 = sbr.rel (%p228_p10) target bundleno = 537 (0x219), region = 40 }
  0x16   : > { %v3059_v0 = vld [vmem:[%s5357_s2 + $0xc] sm:$0xf]  ;;  %vm535_vm0 = vcmask 1043456   ;;  %p267_p11 = scmp.lt.s32.totalorder %s3861_s23, 1  ;;  %v475_v2 = vld [vmem:[%s5357_s2] sm:$0xf] }
  0x17   : > { %3689 = vmatprep.subr.msk.bf16.mxu1 %vm535_vm0, %v3059_v0  ;;  %3688 = vmatprep.subr.msk.bf16.mxu0 %vm535_vm0, %v3059_v0  ;;  %v537_v1 = vsel %vm535_vm0, %v3059_v0, 0  ;;  %v3100_v3 = vld [vmem:[%s5357_s2 + $0x18] sm:$0xf]  ;;  %vm486_vm1 = vcmask 64512   ;;  %vm1984_vm2 = vcmask 1046528   ;;  %v704_v26 = vsel %vm535_vm0, %v475_v2, 0 }
  0x18   : > { %3687 = vmatpush3.bf16.msra.mxu1 %v537_v1  ;;  %3381 = vmatpush3.bf16.msra.mxu0 %v537_v1  ;;  %s3976_s14 = scalar_select %p267_p11, %s3861_s23, 1  ;;  %v874_v14 = vsel %vm535_vm0, %v3100_v3, 0  ;;  %v3135_v18 = vld [vmem:[%s5357_s2 + $0x10] sm:$0xf]  ;;  %v3118_v31 = vld [vmem:[%s5357_s2 + $0x4] sm:$0xf] }
  0x19   : > { %3690 = vmatprep.subr.msk.bf16.mxu1 %vm535_vm0, %v475_v2  ;;  %3691 = vmatprep.subr.msk.bf16.mxu0 %vm535_vm0, %v3100_v3  ;;  %v4100_v58 = vsel %vm535_vm0, %v3118_v31, 0  ;;  %v4109_v63 = vsel %vm535_vm0, %v3135_v18, 0  ;;  %vm1069_vm3 = vsmask.f32 7424  ;;  %vm1278_vm4 = vcmask 1047552   ;;  %s2784_s19 = sld [smem:[#allocation2]] }
  0x1a   : > { %s3698_s15 = smul.u32 384, %s3976_s14  ;;  %vm1279_vm5 = vmand %vm1278_vm4, %vm1069_vm3  ;;  %s263_s4 = sand.u32 1, %s3853_s21  }
  0x1b   : > { %s3699_s30 = smul.u32 24, %s3976_s14  ;;  %s3226_s9 = sshll.u32 %s3861_s23, 12 }
  0x1c   : > { %s3984_s18 = scalar_lea.vmem %s5355_s0, %s3698_s15  ;;  %s5302_s13 = scalar_lea.hbm %s5360_s5, %s3226_s9 }
  0x1d   : > { %v288_v4 = vld [vmem:[%s3984_s18 + $0x8] sm:$0xf]  ;;  %v289_v5 = vld [vmem:[%s3984_s18 + $0xc] sm:$0xf]  ;;  %v290_v6 = vld [vmem:[%s3984_s18 + $0x10] sm:$0xf]  ;;  %s4134_s10 = scalar_lea.vmem %s5356_s1, %s3699_s30 }
  0x1e   : > { %v291_v7 = vld [vmem:[%s3984_s18 + $0x14] sm:$0xf]  ;;  %v3990_v8 = vcombine.low %v288_v4, %v289_v5  ;;  %v3992_v9 = vcombine.low %v289_v5, %v290_v6  ;;  %v3997_v11 = vld [vmem:[%s3984_s18 + $0x18] sm:$0xff]   ;;  %v312_v12 = vld [vmem:[%s3984_s18 + $0x68] sm:$0xf]  ;;  %s3029_s30 = sshll.u32 %s263_s4, 8 }
  0x1f   : > { %v3994_v10 = vcombine.low %v290_v6, %v291_v7  ;;  %v313_v13 = vld [vmem:[%s3984_s18 + $0x6c] sm:$0xf]  ;;  %v314_v15 = vld [vmem:[%s3984_s18 + $0x70] sm:$0xf]  ;;  %v315_v16 = vld [vmem:[%s3984_s18 + $0x74] sm:$0xf] }
  0x20   : > { %3382 = vmatprep.mubr.msk.bf16.mxu0 %vm486_vm1, %v3992_v9  ;;  %v4006_v17 = vcombine.low %v312_v12, %v313_v13  ;;  %v5361_v20 = vrot.slane %v3997_v11, 1  ;;  %v4015_v21 = vcombine.low %v314_v15, %v315_v16  ;;  %v4017_v22 = vcombine.low %v313_v13, %v314_v15  ;;  %v4020_v23 = vld [vmem:[%s3984_s18 + $0x78] sm:$0xff]   ;;  %v294_v24 = vld [vmem:[%s3984_s18 + $0x20] sm:$0xf]  ;;  %v295_v27 = vld [vmem:[%s3984_s18 + $0x24] sm:$0xf] }
  0x21   : > { %v5362_v19 = vrot.slane %v3994_v10, 1  ;;  %3383 = vmatmul.mubr.msk.bf16.vlgmr.msra.gmra.mxu0 %vm486_vm1, %v3997_v11  ;;  %v296_v28 = vld [vmem:[%s3984_s18 + $0x28] sm:$0xf]  ;;  %v297_v29 = vld [vmem:[%s3984_s18 + $0x2c] sm:$0xf]  ;;  %v4038_v30 = vld [vmem:[%s3984_s18 + $0x30] sm:$0xff]   ;;  %v4045_v32 = vcombine.low %v294_v24, %v295_v27 }
  0x22   : > { %3449 = vmatpush3.bf16.msra.mxu0 %v874_v14  ;;  %3398 = vmatprep.mubr.msk.bf16.mxu1 %vm486_vm1, %v4017_v22  ;;  %v4047_v33 = vcombine.low %v296_v28, %v297_v29  ;;  %v4049_v34 = vcombine.low %v295_v27, %v296_v28  ;;  %v318_v35 = vld [vmem:[%s3984_s18 + $0x80] sm:$0xf]  ;;  %v319_v36 = vld [vmem:[%s3984_s18 + $0x84] sm:$0xf]  ;;  %v320_v37 = vld [vmem:[%s3984_s18 + $0x88] sm:$0xf] }
  0x23   : > { %v4028_v25 = vsel %vm1984_vm2, %v5362_v19, %v5361_v20  ;;  %3693 = vmatprep.subr.msk.bf16.mxu0 %vm535_vm0, %v3135_v18  ;;  %3399 = vmatmul.mubr.msk.bf16.vlgmr.msra.gmra.mxu1 %vm486_vm1, %v4020_v23  ;;  %v321_v38 = vld [vmem:[%s3984_s18 + $0x8c] sm:$0xf]  ;;  %v4055_v39 = vcombine.low %v318_v35, %v319_v36  ;;  %v4057_v40 = vcombine.low %v319_v36, %v320_v37  ;;  %v4062_v41 = vld [vmem:[%s3984_s18 + $0x90] sm:$0xff]   ;;  %v300_v43 = vld [vmem:[%s3984_s18 + $0x38] sm:$0xf]  ;;  %v1077_v59 = vshll.u32 %v3990_v8, 16 }
  0x24   : > { %3415 = vmatpush3.bf16.msra.mxu1 %v704_v26  ;;  %3386 = vmatprep.mubr.msk.bf16.mxu0 %vm486_vm1, %v4049_v34  ;;  %v4065_v42 = vcombine.low %v320_v37, %v321_v38  ;;  %v301_v44 = vld [vmem:[%s3984_s18 + $0x3c] sm:$0xf]  ;;  %v302_v45 = vld [vmem:[%s3984_s18 + $0x40] sm:$0xf]  ;;  %v303_v46 = vld [vmem:[%s3984_s18 + $0x44] sm:$0xf] }
  0x25   : > { %3692 = vmatprep.subr.msk.bf16.mxu1 %vm535_vm0, %v3118_v31  ;;  %3402 = vmatprep.mubr.msk.bf16.mxu1 %vm486_vm1, %v4057_v40  ;;  %v4075_v47 = vcombine.low %v300_v43, %v301_v44  ;;  %v324_v48 = vld [vmem:[%s3984_s18 + $0x98] sm:$0xf]  ;;  %v4078_v49 = vcombine.low %v302_v45, %v303_v46  ;;  %v4080_v50 = vcombine.low %v301_v44, %v302_v45  ;;  %v325_v51 = vld [vmem:[%s3984_s18 + $0x9c] sm:$0xf]  ;;  %v326_v52 = vld [vmem:[%s3984_s18 + $0xa0] sm:$0xf] }
  0x26   : > { %v327_v53 = vld [vmem:[%s3984_s18 + $0xa4] sm:$0xf]  ;;  %v4085_v54 = vcombine.low %v324_v48, %v325_v51  ;;  %v4089_v56 = vcombine.low %v325_v51, %v326_v52  ;;  %v4096_v57 = vld [vmem:[%s3984_s18 + $0x48] sm:$0xff]   ;;  %v1085_v60 = vshll.u32 %v3994_v10, 16  ;;  %v1177_v61 = vshll.u32 %v4015_v21, 16  ;;  %s5139_s8 = scalar_lea.vmem [#allocation3], %s3029_s30 }
  0x27   : > { %v4087_v55 = vcombine.low %v326_v52, %v327_v53  ;;  %v306_v62 = vld [vmem:[%s3984_s18 + $0x50] sm:$0xf]  ;;  %v4112_v0 = vld [vmem:[%s3984_s18 + $0xa8] sm:$0xff]   ;;  %v307_v1 = vld [vmem:[%s3984_s18 + $0x54] sm:$0xf]  ;;  %v1089_v18 = vshrl.u32 %v3994_v10, 16 }
  0x28   : > { %5377 = vst [vmem:[#allocation6_spill] sm:$0xff] %v4089_v56  ;;  %v308_v2 = vld [vmem:[%s3984_s18 + $0x58] sm:$0xf]  ;;  %v309_v3 = vld [vmem:[%s3984_s18 + $0x5c] sm:$0xf]  ;;  %v4117_v4 = vcombine.low %v306_v62, %v307_v1  ;;  %v1087_v16 = vrot.slane %v1085_v60, 1 }
  0x29   : > { %3387 = vmatmul.mubr.msk.bf16.gmra.mxu0 %vm486_vm1, %v4038_v30  ;;  %v4119_v5 = vcombine.low %v308_v2, %v309_v3  ;;  %v4121_v6 = vcombine.low %v307_v1, %v308_v2  ;;  %v330_v7 = vld [vmem:[%s3984_s18 + $0xb0] sm:$0xf]  ;;  %v331_v12 = vld [vmem:[%s3984_s18 + $0xb4] sm:$0xf]  ;;  %v332_v13 = vld [vmem:[%s3984_s18 + $0xb8] sm:$0xf] }
  0x2a   : > { %3390 = vmatprep.mubr.msk.bf16.mxu0 %vm486_vm1, %v4080_v50  ;;  %v333_v14 = vld [vmem:[%s3984_s18 + $0xbc] sm:$0xf]  ;;  %v4129_v15 = vcombine.low %v330_v7, %v331_v12  ;;  %v4141_v26 = vcombine.low %v331_v12, %v332_v13  ;;  %v1081_v27 = vshrl.u32 %v3990_v8, 16  ;;  %v4145_v29 = vrot.slane %v1177_v61, 1  ;;  %v4152_v36 = vld [vmem:[%s3984_s18 + $0x60] sm:$0xff]   ;;  %s5310_s23 = scalar_lea.sflag [#allocation4], %s263_s4 }
  0x2b   : > { %3403 = vmatmul.mubr.msk.bf16.gmra.mxu1 %vm486_vm1, %v4062_v41  ;;  %v4139_v24 = vcombine.low %v332_v13, %v333_v14  ;;  %v1181_v31 = vshrl.u32 %v4015_v21, 16  ;;  %v1108_v35 = vshll.u32 %v4047_v33, 16  ;;  %v4155_v37 = vld [vmem:[%s4134_s10 + $0x10] sm:$0xf]  ;;  %v339_v38 = vld [vmem:[%s4134_s10 + $0x14] sm:$0xf]  ;;  %v1091_v43 = vor.u32 %v1089_v18, %v1087_v16 }
  0x2c   : > { %3406 = vmatprep.mubr.msk.bf16.mxu1 %vm486_vm1, %v4089_v56  ;;  %5378 = vst [vmem:[#allocation7_spill] sm:$0xff] %v4141_v26  ;;  %5379 = vst [vmem:[#allocation8_spill] sm:$0xff] %v4155_v37  ;;  %v1104_v44 = vshrl.u32 %v4045_v32, 16  ;;  %v1112_v45 = vshrl.u32 %v4047_v33, 16  ;;  %v4163_v46 = vcombine.low %v4155_v37, %v339_v38  ;;  %v4165_v48 = vrot.slane %v1077_v59, 1  ;;  %v4179_v59 = vld [vmem:[%s4134_s10] sm:$0xff]  }
  0x2d   : > { %v1092_v51 = vshll.u32 %v3997_v11, 16  ;;  %v1096_v52 = vshrl.u32 %v3997_v11, 16  ;;  %v1100_v53 = vshll.u32 %v4045_v32, 16  ;;  %v4171_v60 = vor.u32 %v1181_v31, %v4145_v29  ;;  %v4184_v14 = vld [vmem:[%s3984_s18] sm:$0xff]   ;;  %s3871_s15 = smov [#allocation3]  }
  0x2e   : > { %5380 = vst [vmem:[#allocation9_spill] sm:$0xff] %v4165_v48  ;;  %v1131_v62 = vshll.u32 %v4078_v49, 16  ;;  %v1135_v1 = vshrl.u32 %v4078_v49, 16  ;;  %v1083_v2 = vor.u32 %v1081_v27, %v4165_v48  ;;  %v1110_v12 = vrot.slane %v1108_v35, 1  ;;  %s3797_s16 = sshll.u32 %s3871_s15, 4  ;;  %s3798_s16 = int_to_ptr.vmem [resolvable:$false] %s3797_s16 }
  0x2f   : > { %v1094_v3 = vrot.slane %v1092_v51, 1  ;;  %v1102_v7 = vrot.slane %v1100_v53, 1  ;;  %v1154_v13 = vshll.u32 %v4119_v5, 16  ;;  %v1115_v18 = vshll.u32 %v4038_v30, 16  ;;  %s3799_s17 = scalar_lea.vmem %s3798_s16, 8192 }
  0x30   : > { %v1119_v31 = vshrl.u32 %v4038_v30, 16  ;;  %v1123_v38 = vshll.u32 %v4075_v47, 16  ;;  %v1088_v20 = vsel %vm1069_vm3, %v1083_v2, %v1087_v16  ;;  %v1158_v35 = vshrl.u32 %v4119_v5, 16 }
  0x31   : > { %3391 = vmatmul.mubr.msk.bf16.gmra.mxu0 %vm486_vm1, %v4096_v57  ;;  %v1095_v27 = vsel %vm1069_vm3, %v1091_v43, %v1094_v3  ;;  %v1098_v51 = vor.u32 %v1096_v52, %v1094_v3  ;;  %v1106_v53 = vor.u32 %v1104_v44, %v1102_v7  ;;  %v1284_v19 = vunpack.c.h.b16 %v1088_v20 }
  0x32   : > { %3394 = vmatprep.mubr.msk.bf16.mxu0 %vm486_vm1, %v4121_v6  ;;  %v1285_v28 = vunpack.c.l.b16 %v1095_v27  ;;  %v1114_v61 = vor.u32 %v1112_v45, %v1110_v12  ;;  %v1125_v56 = vrot.slane %v1123_v38, 1  ;;  %v1127_v20 = vshrl.u32 %v4075_v47, 16 }
  0x33   : > { %3407 = vmatmul.mubr.msk.bf16.gmra.mxu1 %vm486_vm1, %v4112_v0  ;;  %v4197_v48 = vsel %vm1069_vm3, %v1098_v51, %v1102_v7  ;;  %v1111_v37 = vsel %vm1069_vm3, %v1106_v53, %v1110_v12  ;;  %v1133_v44 = vrot.slane %v1131_v62, 1  ;;  %v1138_v2 = vshll.u32 %v4096_v57, 16  ;;  %v4211_v7 = vld [vmem:[%s5357_s2 + $0x8] sm:$0xf] }
  0x34   : > { %3410 = vmatprep.mubr.msk.bf16.mxu1 %vm486_vm1, %v4141_v26  ;;  %v1117_v26 = vrot.slane %v1115_v18, 1  ;;  %v4202_v16 = vpack.c.b16 %v1285_v28, %v1284_v19  ;;  %v1288_v43 = vunpack.c.h.b16 %v1111_v37  ;;  %v1142_v3 = vshrl.u32 %v4096_v57, 16 }
  0x35   : > { %v1129_v18 = vor.u32 %v1127_v20, %v1125_v56  ;;  %v1137_v19 = vor.u32 %v1135_v1, %v1133_v44  ;;  %v1146_v28 = vshll.u32 %v4117_v4, 16  ;;  %v1156_v62 = vrot.slane %v1154_v13, 1 }
  0x36   : > { %v1118_v45 = vsel %vm1069_vm3, %v1114_v61, %v1117_v26  ;;  %v1121_v52 = vor.u32 %v1119_v31, %v1117_v26  ;;  %v1140_v26 = vrot.slane %v1138_v2, 1  ;;  %v1150_v61 = vshrl.u32 %v4117_v4, 16 }
  0x37   : > { %v1289_v12 = vunpack.c.l.b16 %v1118_v45  ;;  %v1134_v1 = vsel %vm1069_vm3, %v1129_v18, %v1133_v44  ;;  %v1148_v38 = vrot.slane %v1146_v28, 1  ;;  %v1161_v27 = vshll.u32 %v4152_v36, 16 }
  0x38   : > { %v4217_v37 = vsel %vm1069_vm3, %v1121_v52, %v1125_v56  ;;  %v1141_v56 = vsel %vm1069_vm3, %v1137_v19, %v1140_v26  ;;  %v1292_v51 = vunpack.c.h.b16 %v1134_v1  ;;  %v1144_v53 = vor.u32 %v1142_v3, %v1140_v26 }
  0x39   : > { %3395 = vmatmul.mubr.msk.bf16.gmra.mxu0 %vm486_vm1, %v4152_v36  ;;  %v4223_v31 = vpack.c.b16 %v1289_v12, %v1288_v43  ;;  %v1160_v13 = vor.u32 %v1158_v35, %v1156_v62  ;;  %v1293_v43 = vunpack.c.l.b16 %v1141_v56  ;;  %v1152_v20 = vor.u32 %v1150_v61, %v1148_v38 }
  0x3a   : > { %3450 = vmatprep.mubr.msk.bf16.mxu0 %vm486_vm1, %v3997_v11  ;;  %v1163_v45 = vrot.slane %v1161_v27, 1  ;;  %v1165_v44 = vshrl.u32 %v4152_v36, 16  ;;  %v1204_v52 = vshrl.u32 %v4065_v42, 16  ;;  %v4240_v2 = vsel %vm1069_vm3, %v1144_v53, %v1148_v38 }
  0x3b   : > { %3411 = vmatmul.mubr.msk.bf16.gmra.mxu1 %vm486_vm1, %v4179_v59  ;;  %v1169_v35 = vshll.u32 %v4006_v17, 16  ;;  %v1184_v3 = vshll.u32 %v4020_v23, 16  ;;  %v4247_v12 = vpack.c.b16 %v1293_v43, %v1292_v51  ;;  %v1157_v18 = vsel %vm1069_vm3, %v1152_v20, %v1156_v62 }
  0x3c   : > { %3416 = vmatprep.mubr.msk.bf16.mxu1 %vm486_vm1, %v4184_v14  ;;  %v1164_v19 = vsel %vm1069_vm3, %v1160_v13, %v1163_v45  ;;  %v1296_v28 = vunpack.c.h.b16 %v1157_v18  ;;  %v1167_v61 = vor.u32 %v1165_v44, %v1163_v45  ;;  %v1196_v27 = vshrl.u32 %v4055_v39, 16  ;;  %v336_v44 = vld [vmem:[%s4134_s10 + $0x8] sm:$0xf] }
  0x3d   : > { %v1297_v26 = vunpack.c.l.b16 %v1164_v19  ;;  %v1171_v1 = vrot.slane %v1169_v35, 1  ;;  %v5383_v62 = vshll.u32 %v4065_v42, 16  ;;  %v5384_v13 = vshrl.u32 %v4006_v17, 16 }
  0x3e   : > { %v1207_v20 = vshll.u32 %v4062_v41, 16  ;;  %v1223_v45 = vshll.u32 %v4087_v55, 16  ;;  %v1227_v19 = vshrl.u32 %v4087_v55, 16 }
  0x3f   : > { %v1202_v56 = vrot.slane %v5383_v62, 1  ;;  %v4263_v51 = vpack.c.b16 %v1297_v26, %v1296_v28  ;;  %v4266_v53 = vsel %vm1069_vm3, %v1167_v61, %v1171_v1  ;;  %v1175_v43 = vor.u32 %v5384_v13, %v1171_v1  ;;  %v4286_v1 = vld [vmem:[%s4134_s10 + $0xc] sm:$0xf]  ;;  %s2930_s10 = sshll.u32 %s5139_s8, 4  ;;  %s5304_s10 = int_to_ptr.vmem [resolvable:$true] %s2930_s10 }
  0x40   : > { %v4282_v26 = vrot.slane %v1207_v20, 1  ;;  %v1246_v61 = vshll.u32 %v4139_v24, 16  ;;  %s3793_s14 = scalar_lea.vmem %s5304_s10, 4096  ;;  %p3800_p1 = scmp.lt.s32.totalorder %s5304_s10, %s3798_s16 }
  0x41   : > { %3451 = vmatmul.mubr.msk.bf16.vlgmr.msra.gmra.mxu0 %vm486_vm1, %v4049_v34  ;;  %v1206_v18 = vor.u32 %v1204_v52, %v1202_v56  ;;  %v4293_v52 = vcombine.low %v336_v44, %v4286_v1  ;;  %v1238_v44 = vshll.u32 %v4129_v15, 16  ;;  %p3794_p12 = scmp.ne.s32.totalorder %s5304_s10, %s3793_s14  ;;  %p3801_p2 = scmp.lt.s32.totalorder %s3799_s17, %s3793_s14 }
  0x42   : > { %3517 = vmatpush3.bf16.msra.mxu0 %v4109_v63  ;;  %3454 = vmatprep.mubr.msk.bf16.mxu0 %vm486_vm1, %v4038_v30  ;;  %v4233_v63 = vld [vmem:[%s5357_s2 + $0x1c] sm:$0xf]  ;;  %5385 = vst [vmem:[#allocation12_spill] sm:$0xff] %v4282_v26 }
  0x43   : > { %3695 = vmatprep.subr.msk.bf16.mxu0 %vm535_vm0, %v4211_v7  ;;  %3417 = vmatmul.mubr.msk.bf16.vlgmr.msra.gmra.mxu1 %vm486_vm1, %v3992_v9  ;;  %v1192_v9 = vshll.u32 %v4055_v39, 16  ;;  %p3795_p13 = pnand %p3794_p12, %p3947_p4  ;;  %p3802_p3 = por %p3801_p2, %p3800_p1 }
  0x44   : > { %3483 = vmatpush3.bf16.msra.mxu1 %v4100_v58  ;;  %3420 = vmatprep.mubr.msk.bf16.mxu1 %vm486_vm1, %v3997_v11  ;;  %v4254_v58 = vrot.slane %v1184_v3, 1 }
  0x45   : > { %3694 = vmatprep.subr.msk.bf16.mxu1 %vm535_vm0, %v4233_v63  ;;  %v4256_v38 = vrot.slane %v1192_v9, 1  ;;  %v1180_v9 = vsel %vm1069_vm3, %v1175_v43, %v4145_v29  ;;  %v1210_v29 = vsel %vm1069_vm3, %v1206_v18, %v4282_v26  ;;  %v1219_v43 = vshrl.u32 %v4085_v54, 16  ;;  %p3796_p0 = pneg %p3795_p13 }
  0x46   : > { %5381 = vst [vmem:[#allocation10_spill] sm:$0xff] %v4254_v58  ;;  %v1187_v35 = vsel %vm1069_vm3, %v4171_v60, %v4254_v58  ;;  %v1300_v62 = vunpack.c.h.b16 %v1180_v9  ;;  %v1215_v60 = vshll.u32 %v4085_v54, 16  ;;  %v1242_v9 = vshrl.u32 %v4129_v15, 16 }
  0x47   : > { %5382 = vst [vmem:[#allocation11_spill] sm:$0xff] %v4256_v38  ;;  %v1198_v3 = vor.u32 %v1196_v27, %v4256_v38  ;;  %v1301_v28 = vunpack.c.l.b16 %v1187_v35  ;;  %v1250_v18 = vshrl.u32 %v4139_v24, 16  ;;  %p3803_p5 = pnand %p3802_p3, %p3796_p0 }
  0x48   : > { %v4302_v35 = vrot.slane %v1215_v60, 1  ;;  %v1253_v60 = vshll.u32 %v4179_v59, 16 }
  0x49   : > { %3455 = vmatmul.mubr.msk.bf16.gmra.mxu0 %vm486_vm1, %v4080_v50  ;;  %v1203_v13 = vsel %vm1069_vm3, %v1198_v3, %v1202_v56  ;;  %v4300_v20 = vpack.c.b16 %v1301_v28, %v1300_v62  ;;  %v1305_v56 = vunpack.c.l.b16 %v1210_v29  ;;  %v1225_v3 = vrot.slane %v1223_v45, 1 }
  0x4a   : > { %3458 = vmatprep.mubr.msk.bf16.mxu0 %vm486_vm1, %v4096_v57  ;;  %v1304_v27 = vunpack.c.h.b16 %v1203_v13  ;;  %5387 = vst [vmem:[#allocation14_spill] sm:$0xff] %v4302_v35  ;;  %v1221_v26 = vor.u32 %v1219_v43, %v4302_v35  ;;  %v4315_v62 = vrot.slane %v1238_v44, 1  ;;  %v1248_v45 = vrot.slane %v1246_v61, 1 }
  0x4b   : > { %3421 = vmatmul.mubr.msk.bf16.gmra.mxu1 %vm486_vm1, %v4049_v34  ;;  %5386 = vst [vmem:[#allocation13_spill] sm:$0xff] %v4300_v20  ;;  %v1230_v34 = vshll.u32 %v4112_v0, 16  ;;  %v1229_v38 = vor.u32 %v1227_v19, %v1225_v3  ;;  %v1261_v43 = vshll.u32 %v4293_v52, 16  ;;  %v2046_v20 = vunpack.c.l.b16 %v4028_v25 }
  0x4c   : > { %3424 = vmatprep.mubr.msk.bf16.mxu1 %vm486_vm1, %v4038_v30  ;;  %v4308_v13 = vpack.c.b16 %v1305_v56, %v1304_v27  ;;  %v1226_v29 = vsel %vm1069_vm3, %v1221_v26, %v1225_v3  ;;  %v1257_v27 = vshrl.u32 %v4179_v59, 16  ;;  %v1244_v44 = vor.u32 %v1242_v9, %v4315_v62 }
  0x4d   : > { %v4313_v28 = vrot.slane %v1230_v34, 1  ;;  %v1308_v34 = vunpack.c.h.b16 %v1226_v29  ;;  %v1252_v35 = vor.u32 %v1250_v18, %v1248_v45  ;;  %v4327_v58 = vrot.slane %v1261_v43, 1 }
  0x4e   : > { %5388 = vst [vmem:[#allocation15_spill] sm:$0xff] %v4308_v13  ;;  %v1255_v13 = vrot.slane %v1253_v60, 1  ;;  %v1249_v26 = vsel %vm1069_vm3, %v1244_v44, %v1248_v45  ;;  %v1985_v3 = vrot.slane %v4184_v14, 1  ;;  %v1986_v19 = vrot.slane %v3990_v8, 1 }
  0x4f   : > { %v1233_v56 = vsel %vm1069_vm3, %v1229_v38, %v4313_v28  ;;  %v1312_v18 = vunpack.c.h.b16 %v1249_v26  ;;  %v1994_v25 = vrot.slane %v4047_v33, 1  ;;  %v5389_v45 = vrot.slane %v3994_v10, 1 }
  0x50   : > { %v1309_v61 = vunpack.c.l.b16 %v1233_v56  ;;  %v1256_v9 = vsel %vm1069_vm3, %v1252_v35, %v1255_v13  ;;  %v1259_v60 = vor.u32 %v1257_v27, %v1255_v13  ;;  %v2000_v8 = vrot.slane %v4078_v49, 1 }
  0x51   : > { %3459 = vmatmul.mubr.msk.bf16.gmra.mxu0 %vm486_vm1, %v4121_v6  ;;  %v1313_v29 = vunpack.c.l.b16 %v1256_v9  ;;  %v1989_v43 = vsel %vm1984_vm2, %v1986_v19, %v5389_v45  ;;  %v5390_v35 = vrot.slane %v4163_v46, 1  ;;  %v2012_v27 = vrot.slane %v4015_v21, 1 }
  0x52   : > { %3462 = vmatprep.mubr.msk.bf16.mxu0 %vm486_vm1, %v4152_v36  ;;  %v4337_v38 = vpack.c.b16 %v1309_v61, %v1308_v34  ;;  %v4350_v56 = vsel %vm1069_vm3, %v1259_v60, %v4327_v58  ;;  %v2045_v33 = vunpack.c.h.b16 %v1989_v43  ;;  %v2006_v34 = vrot.slane %v4119_v5, 1 }
  0x53   : > { %3425 = vmatmul.mubr.msk.bf16.gmra.mxu1 %vm486_vm1, %v4080_v50  ;;  %v4342_v50 = vsel %vm1984_vm2, %v1985_v3, %v1986_v19  ;;  %v4355_v13 = vsel %vm1984_vm2, %v5390_v35, %v1985_v3  ;;  %v4361_v10 = vpack.c.b16 %v1313_v29, %v1312_v18  ;;  %v1992_v49 = vrot.slane %v4045_v32, 1 }
  0x54   : > { %3428 = vmatprep.mubr.msk.bf16.mxu1 %vm486_vm1, %v4096_v57  ;;  %v4366_v19 = vpack.c.b16 %v2046_v20, %v2045_v33  ;;  %v1996_v44 = vrot.slane %v4038_v30, 1  ;;  %v1998_v61 = vrot.slane %v4075_v47, 1  ;;  %v2002_v21 = vrot.slane %v4096_v57, 1 }
  0x55   : > { %v5391_v5 = vrot.slane %v3997_v11, 1  ;;  %v1995_v3 = vsel %vm1984_vm2, %v1992_v49, %v1994_v25  ;;  %v2004_v32 = vrot.slane %v4117_v4, 1  ;;  %v2008_v9 = vrot.slane %v4152_v36, 1 }
  0x56   : > { %v1997_v20 = vsel %vm1984_vm2, %v1994_v25, %v1996_v44  ;;  %v2049_v18 = vunpack.c.h.b16 %v1995_v3  ;;  %v4381_v30 = vsel %vm1984_vm2, %v1996_v44, %v1998_v61  ;;  %v2001_v47 = vsel %vm1984_vm2, %v1998_v61, %v2000_v8 }
  0x57   : > { %v4374_v26 = vsel %vm1984_vm2, %v5391_v5, %v1992_v49  ;;  %v2050_v11 = vunpack.c.l.b16 %v1997_v20  ;;  %v2003_v57 = vsel %vm1984_vm2, %v2000_v8, %v2002_v21  ;;  %v2053_v60 = vunpack.c.h.b16 %v2001_v47  ;;  %v5392_v20 = vld [vmem:[#allocation6_spill] sm:$0xff] }
  0x58   : > { %v4388_v29 = vsel %vm1984_vm2, %v2002_v21, %v2004_v32  ;;  %v2054_v4 = vunpack.c.l.b16 %v2003_v57  ;;  %v2007_v25 = vsel %vm1984_vm2, %v2004_v32, %v2006_v34  ;;  %v2009_v45 = vsel %vm1984_vm2, %v2006_v34, %v2008_v9 }
  0x59   : > { %3463 = vmatmul.mubr.msk.bf16.gmra.mxu0 %vm486_vm1, %v4017_v22  ;;  %v2010_v43 = vrot.slane %v4006_v17, 1  ;;  %v4395_v35 = vpack.c.b16 %v2050_v11, %v2049_v18  ;;  %v2058_v33 = vunpack.c.l.b16 %v2009_v45  ;;  %v2014_v8 = vrot.slane %v4020_v23, 1 }
  0x5a   : > { %3466 = vmatprep.mubr.msk.bf16.mxu0 %vm486_vm1, %v4020_v23  ;;  %v4398_v49 = vpack.c.b16 %v2054_v4, %v2053_v60  ;;  %v2018_v5 = vrot.slane %v4065_v42, 1  ;;  %v2016_v32 = vrot.slane %v4055_v39, 1  ;;  %v2024_v11 = vrot.slane %v4087_v55, 1 }
  0x5b   : > { %3429 = vmatmul.mubr.msk.bf16.gmra.mxu1 %vm486_vm1, %v4121_v6  ;;  %v2057_v6 = vunpack.c.h.b16 %v2007_v25  ;;  %v4401_v44 = vsel %vm1984_vm2, %v2008_v9, %v2010_v43  ;;  %v2015_v17 = vsel %vm1984_vm2, %v2012_v27, %v2014_v8  ;;  %v2020_v9 = vrot.slane %v4062_v41, 1 }
  0x5c   : > { %3432 = vmatprep.mubr.msk.bf16.mxu1 %vm486_vm1, %v4152_v36  ;;  %v2013_v36 = vsel %vm1984_vm2, %v2010_v43, %v2012_v27  ;;  %v2062_v21 = vunpack.c.l.b16 %v2015_v17  ;;  %v2019_v27 = vsel %vm1984_vm2, %v2016_v32, %v2018_v5  ;;  %v2022_v57 = vrot.slane %v4085_v54, 1  ;;  %v5393_v43 = vld [vmem:[#allocation7_spill] sm:$0xff] }
  0x5d   : > { %v4406_v61 = vpack.c.b16 %v2058_v33, %v2057_v6  ;;  %v2061_v34 = vunpack.c.h.b16 %v2013_v36  ;;  %v2021_v42 = vsel %vm1984_vm2, %v2018_v5, %v2020_v9  ;;  %v2065_v18 = vunpack.c.h.b16 %v2019_v27 }
  0x5e   : > { %v2026_v60 = vrot.slane %v4112_v0, 1  ;;  %v1072_v4 = vshll.u32 %v4184_v14, 16  ;;  %v1269_v25 = vshll.u32 %v4163_v46, 16  ;;  %v1265_v45 = vshrl.u32 %v4293_v52, 16 }
  0x5f   : > { %v4414_v3 = vpack.c.b16 %v2062_v21, %v2061_v34  ;;  %v2025_v55 = vsel %vm1984_vm2, %v2022_v57, %v2024_v11  ;;  %v1273_v36 = vshrl.u32 %v4163_v46, 16  ;;  %v1070_v17 = vshrl.u32 %v4184_v14, 16 }
  0x60   : > { %v2069_v6 = vunpack.c.h.b16 %v2025_v55  ;;  %v1074_v34 = vrot.slane %v1072_v4, 1  ;;  %v2030_v5 = vrot.slane %v4139_v24, 1  ;;  %v1267_v27 = vor.u32 %v1265_v45, %v4327_v58 }
  0x61   : > { %3467 = vmatmul.mubr.msk.bf16.gmra.mxu0 %vm486_vm1, %v4057_v40  ;;  %v2032_v4 = vrot.slane %v4179_v59, 1 }
  0x62   : > { %3470 = vmatprep.mubr.msk.bf16.mxu0 %vm486_vm1, %v4062_v41  ;;  %v1075_v55 = vor.u32 %v1074_v34, %v1070_v17 }
  0x63   : > { %3433 = vmatmul.mubr.msk.bf16.gmra.mxu1 %vm486_vm1, %v4017_v22  ;;  %v2066_v22 = vunpack.c.l.b16 %v2021_v42  ;;  %v1271_v42 = vrot.slane %v1269_v25, 1 }
  0x64   : > { %3436 = vmatprep.mubr.msk.bf16.mxu1 %vm486_vm1, %v4020_v23 }
  0x65   : > { %v4432_v47 = vpack.c.b16 %v2066_v22, %v2065_v18  ;;  %v5394_v18 = vld [vmem:[#allocation8_spill] sm:$0xff]  ;;  %v1275_v14 = vor.u32 %v1273_v36, %v1271_v42  ;;  %v1272_v24 = vsel %vm1069_vm3, %v1267_v27, %v1271_v42  ;;  %v3203_v27 = vld [vmem:[%s5357_s2 + $0x20] sm:$0xf]  ;;  %v1789_v42 = vsel %vm535_vm0, %v4233_v63, 0  ;;  %v5396_v63 = vld [vmem:[#allocation13_spill] sm:$0xff] }
  0x66   : > { %v3101_v22 = vcombine.low %v4286_v1, %v5394_v18  ;;  %v2033_v1 = vsel %vm1984_vm2, %v2030_v5, %v2032_v4  ;;  %v1316_v25 = vunpack.c.h.b16 %v1272_v24  ;;  %v5399_v24 = vld [vmem:[#allocation15_spill] sm:$0xff] }
  0x67   : > { %v1280_v58 = vsel %vm1279_vm5, %v1275_v14, %v1074_v34 }
  0x68   : > { %v1317_v45 = vunpack.c.l.b16 %v1280_v58  ;;  %v5400_v58 = vld [vmem:[#allocation12_spill] sm:$0xff] }
  0x69   : > { %3471 = vmatmul.mubr.msk.bf16.gmra.mxu0 %vm486_vm1, %v5392_v20 }
  0x6a   : > { %3474 = vmatprep.mubr.msk.bf16.mxu0 %vm486_vm1, %v4112_v0  ;;  %v4481_v17 = vpack.c.b16 %v1317_v45, %v1316_v25  ;;  %v1234_v45 = vshrl.u32 %v4112_v0, 16 }
  0x6b   : > { %3437 = vmatmul.mubr.msk.bf16.gmra.mxu1 %vm486_vm1, %v4057_v40  ;;  %v2027_v40 = vsel %vm1984_vm2, %v2024_v11, %v2026_v60  ;;  %v2028_v11 = vrot.slane %v4129_v15, 1 }
  0x6c   : > { %3440 = vmatprep.mubr.msk.bf16.mxu1 %vm486_vm1, %v4062_v41  ;;  %v2070_v33 = vunpack.c.l.b16 %v2027_v40 }
  0x6e   : > { %v4456_v21 = vpack.c.b16 %v2070_v33, %v2069_v6  ;;  %v2074_v6 = vunpack.c.l.b16 %v2033_v1  ;;  %v5395_v33 = vld [vmem:[#allocation9_spill] sm:$0xff]  ;;  %v5401_v1 = vld [vmem:[#allocation14_spill] sm:$0xff] }
  0x6f   : > { %v1080_v36 = vsel %vm1069_vm3, %v1075_v55, %v5395_v33  ;;  %v1211_v55 = vshrl.u32 %v4062_v41, 16  ;;  %v2078_v33 = vunpack.c.l.b16 %v4355_v13 }
  0x71   : > { %3475 = vmatmul.mubr.msk.bf16.gmra.mxu0 %vm486_vm1, %v5393_v43 }
  0x72   : > { %3478 = vmatprep.mubr.msk.bf16.mxu0 %vm486_vm1, %v4179_v59 }
  0x73   : > { %3441 = vmatmul.mubr.msk.bf16.gmra.mxu1 %vm486_vm1, %v5392_v20  ;;  %v2031_v20 = vsel %vm1984_vm2, %v2028_v11, %v2030_v5  ;;  %v2146_v5 = vsel %vm535_vm0, %v4211_v7, 0  ;;  %v3186_v7 = vld [vmem:[%s5357_s2 + $0x14] sm:$0xf] }
  0x74   : > { %3444 = vmatprep.mubr.msk.bf16.mxu1 %vm486_vm1, %v4112_v0  ;;  %v2073_v40 = vunpack.c.h.b16 %v2031_v20  ;;  %v1213_v20 = vor.u32 %v1211_v55, %v5400_v58  ;;  %v2348_v13 = vsel %vm535_vm0, %v3186_v7, 0 }
  0x76   : > { %v4483_v34 = vpack.c.b16 %v2074_v6, %v2073_v40  ;;  %v1218_v25 = vsel %vm1069_vm3, %v1213_v20, %v5401_v1  ;;  %v1236_v40 = vor.u32 %v1234_v45, %v4313_v28  ;;  %v2034_v28 = vrot.slane %v4293_v52, 1 }
  0x78   : > { %v1241_v6 = vsel %vm1069_vm3, %v1236_v40, %v4315_v62 }
  0x79   : > { %3479 = vmatmul.mubr.msk.bf16.gmra.mxu0 %vm486_vm1, %v3101_v22  ;;  %v5398_v22 = vld [vmem:[#allocation11_spill] sm:$0xff] }
  0x7a   : > { %3518 = vmatprep.mubr.msk.bf16.mxu0 %vm486_vm1, %v4202_v16 }
  0x7b   : > { %3445 = vmatmul.mubr.msk.bf16.gmra.mxu1 %vm486_vm1, %v5393_v43  ;;  %v5397_v43 = vld [vmem:[#allocation10_spill] sm:$0xff] }
  0x7c   : > { %3484 = vmatprep.mubr.msk.bf16.mxu1 %vm486_vm1, %v1080_v36  ;;  %v5402_v36 = vrot.slane %v4163_v46, 1  ;;  %v2550_v46 = vsel %vm535_vm0, %v3203_v27, 0 }
  0x7e   : > { %v2037_v62 = vsel %vm1984_vm2, %v2034_v28, %v5402_v36 }
  0x81   : > { %3519 = vmatmul.mubr.msk.bf16.vlgmr.msra.gmra.mxu0 %vm486_vm1, %v4197_v48 }
  0x82   : > { %3585 = vmatpush3.bf16.msra.mxu0 %v2146_v5  ;;  %3522 = vmatprep.mubr.msk.bf16.mxu0 %vm486_vm1, %v4223_v31  ;;  %v2077_v5 = vunpack.c.h.b16 %v2037_v62 }
  0x83   : > { %3697 = vmatprep.subr.msk.bf16.mxu0 %vm535_vm0, %v3203_v27  ;;  %3485 = vmatmul.mubr.msk.bf16.vlgmr.msra.gmra.mxu1 %vm486_vm1, %v4202_v16  ;;  %v1188_v16 = vshrl.u32 %v4020_v23, 16  ;;  %v4667_v27 = vsel %vm1984_vm2, %v2026_v60, %v2028_v11 }
  0x84   : > { %3551 = vmatpush3.bf16.msra.mxu1 %v1789_v42  ;;  %3488 = vmatprep.mubr.msk.bf16.mxu1 %vm486_vm1, %v4197_v48  ;;  %v4573_v42 = vpack.c.b16 %v2078_v33, %v2077_v5 }
  0x85   : > { %3696 = vmatprep.subr.msk.bf16.mxu1 %vm535_vm0, %v3186_v7  ;;  %v1190_v18 = vor.u32 %v1188_v16, %v5397_v43 }
  0x87   : > { %v1195_v14 = vsel %vm1069_vm3, %v1190_v18, %v5398_v22 }
  0x89   : > { %3523 = vmatmul.mubr.msk.bf16.gmra.mxu0 %vm486_vm1, %v4217_v37 }
  0x8a   : > { %3526 = vmatprep.mubr.msk.bf16.mxu0 %vm486_vm1, %v4247_v12 }
  0x8b   : > { %3489 = vmatmul.mubr.msk.bf16.gmra.mxu1 %vm486_vm1, %v4223_v31 }
  0x8c   : > { %3492 = vmatprep.mubr.msk.bf16.mxu1 %vm486_vm1, %v4217_v37 }
  0x91   : > { %3527 = vmatmul.mubr.msk.bf16.gmra.mxu0 %vm486_vm1, %v4240_v2 }
  0x92   : > { %3530 = vmatprep.mubr.msk.bf16.mxu0 %vm486_vm1, %v4263_v51 }
  0x93   : > { %3493 = vmatmul.mubr.msk.bf16.gmra.mxu1 %vm486_vm1, %v4247_v12 }
  0x94   : > { %3496 = vmatprep.mubr.msk.bf16.mxu1 %vm486_vm1, %v4240_v2 }
  0x99   : > { %3531 = vmatmul.mubr.msk.bf16.gmra.mxu0 %vm486_vm1, %v4266_v53 }
  0x9a   : > { %3534 = vmatprep.mubr.msk.bf16.mxu0 %vm486_vm1, %v5396_v63 }
  0x9b   : > { %3497 = vmatmul.mubr.msk.bf16.gmra.mxu1 %vm486_vm1, %v4263_v51 }
  0x9c   : > { %3500 = vmatprep.mubr.msk.bf16.mxu1 %vm486_vm1, %v4266_v53 }
  0xa1   : > { %3535 = vmatmul.mubr.msk.bf16.gmra.mxu0 %vm486_vm1, %v1195_v14 }
  0xa2   : > { %3538 = vmatprep.mubr.msk.bf16.mxu0 %vm486_vm1, %v5399_v24 }
  0xa3   : > { %3501 = vmatmul.mubr.msk.bf16.gmra.mxu1 %vm486_vm1, %v5396_v63 }
  0xa4   : > { %3504 = vmatprep.mubr.msk.bf16.mxu1 %vm486_vm1, %v1195_v14 }
  0xa9   : > { %3539 = vmatmul.mubr.msk.bf16.gmra.mxu0 %vm486_vm1, %v1218_v25 }
  0xaa   : > { %3542 = vmatprep.mubr.msk.bf16.mxu0 %vm486_vm1, %v4337_v38 }
  0xab   : > { %3505 = vmatmul.mubr.msk.bf16.gmra.mxu1 %vm486_vm1, %v5399_v24 }
  0xac   : > { %3508 = vmatprep.mubr.msk.bf16.mxu1 %vm486_vm1, %v1218_v25 }
  0xb1   : > { %3543 = vmatmul.mubr.msk.bf16.gmra.mxu0 %vm486_vm1, %v1241_v6 }
  0xb2   : > { %3546 = vmatprep.mubr.msk.bf16.mxu0 %vm486_vm1, %v4361_v10 }
  0xb3   : > { %3509 = vmatmul.mubr.msk.bf16.gmra.mxu1 %vm486_vm1, %v4337_v38 }
  0xb4   : > { %3512 = vmatprep.mubr.msk.bf16.mxu1 %vm486_vm1, %v1241_v6 }
  0xb9   : > { %3547 = vmatmul.mubr.msk.bf16.gmra.mxu0 %vm486_vm1, %v4350_v56 }
  0xba   : > { %3586 = vmatprep.mubr.msk.bf16.mxu0 %vm486_vm1, %v4342_v50 }
  0xbb   : > { %3513 = vmatmul.mubr.msk.bf16.gmra.mxu1 %vm486_vm1, %v4361_v10 }
  0xbc   : > { %3552 = vmatprep.mubr.msk.bf16.mxu1 %vm486_vm1, %v4197_v48  ;;  %v4617_v48 = vsel %vm1984_vm2, %v2014_v8, %v2016_v32 }
  0xc1   : > { %3587 = vmatmul.mubr.msk.bf16.vlgmr.msra.gmra.mxu0 %vm486_vm1, %v4366_v19 }
  0xc2   : > { %3653 = vmatpush3.bf16.msra.mxu0 %v2550_v46  ;;  %3590 = vmatprep.mubr.msk.bf16.mxu0 %vm486_vm1, %v4374_v26 }
  0xc3   : > { %3553 = vmatmul.mubr.msk.bf16.vlgmr.msra.gmra.mxu1 %vm486_vm1, %v4223_v31 }
  0xc4   : > { %3619 = vmatpush3.bf16.msra.mxu1 %v2348_v13  ;;  %3556 = vmatprep.mubr.msk.bf16.mxu1 %vm486_vm1, %v4217_v37 }
  0xc9   : > { %3591 = vmatmul.mubr.msk.bf16.gmra.mxu0 %vm486_vm1, %v4395_v35 }
  0xca   : > { %3594 = vmatprep.mubr.msk.bf16.mxu0 %vm486_vm1, %v4381_v30 }
  0xcb   : > { %3557 = vmatmul.mubr.msk.bf16.gmra.mxu1 %vm486_vm1, %v4247_v12 }
  0xcc   : > { %3560 = vmatprep.mubr.msk.bf16.mxu1 %vm486_vm1, %v4240_v2 }
  0xd1   : > { %3595 = vmatmul.mubr.msk.bf16.gmra.mxu0 %vm486_vm1, %v4398_v49 }
  0xd2   : > { %3598 = vmatprep.mubr.msk.bf16.mxu0 %vm486_vm1, %v4388_v29 }
  0xd3   : > { %3561 = vmatmul.mubr.msk.bf16.gmra.mxu1 %vm486_vm1, %v4263_v51  ;;  %v4637_v51 = vsel %vm1984_vm2, %v2020_v9, %v2022_v57 }
  0xd4   : > { %3564 = vmatprep.mubr.msk.bf16.mxu1 %vm486_vm1, %v4266_v53 }
  0xd9   : > { %3599 = vmatmul.mubr.msk.bf16.gmra.mxu0 %vm486_vm1, %v4406_v61 }
  0xda   : > { %3602 = vmatprep.mubr.msk.bf16.mxu0 %vm486_vm1, %v4401_v44 }
  0xdb   : > { %3565 = vmatmul.mubr.msk.bf16.gmra.mxu1 %vm486_vm1, %v5396_v63 }
  0xdc   : > { %3568 = vmatprep.mubr.msk.bf16.mxu1 %vm486_vm1, %v1195_v14 }
  0xe1   : > { %v3384_v37 = vpop.f32.mrf.mxu0  ;;  %3603 = vmatmul.mubr.msk.bf16.gmra.mxu0 %vm486_vm1, %v4414_v3 }
  0xe2   : > { %3606 = vmatprep.mubr.msk.bf16.mxu0 %vm486_vm1, %v4617_v48 }
  0xe3   : > { %v573_v31 = vpop.f32.mrf.mxu0  ;;  %v4623_v2 = vpop.f32.mrf.mxu1  ;;  %3569 = vmatmul.mubr.msk.bf16.gmra.mxu1 %vm486_vm1, %v5399_v24 }
  0xe4   : > { %3572 = vmatprep.mubr.msk.bf16.mxu1 %vm486_vm1, %v1218_v25 }
  0xe5   : > { %v3385_v12 = vpop.f32.mrf.mxu0  ;;  %v4628_v23 = vpop.f32.mrf.mxu1 }
  0xe7   : > { %v4630_v39 = vpop.f32.mrf.mxu0  ;;  %v4639_v53 = vpop.f32.mrf.mxu1 }
  0xe9   : > { %v4641_v50 = vpop.f32.mrf.mxu0  ;;  %3607 = vmatmul.mubr.msk.bf16.gmra.mxu0 %vm486_vm1, %v4432_v47  ;;  %v4647_v8 = vpop.f32.mrf.mxu1 }
  0xea   : > { %3610 = vmatprep.mubr.msk.bf16.mxu0 %vm486_vm1, %v4637_v51 }
  0xeb   : > { %v4649_v32 = vpop.f32.mrf.mxu0  ;;  %v4651_v54 = vpop.f32.mrf.mxu1  ;;  %3573 = vmatmul.mubr.msk.bf16.gmra.mxu1 %vm486_vm1, %v4337_v38 }
  0xec   : > { %3576 = vmatprep.mubr.msk.bf16.mxu1 %vm486_vm1, %v1241_v6 }
  0xed   : > { %v4655_v41 = vpop.f32.mrf.mxu0  ;;  %v4658_v9 = vpop.f32.mrf.mxu1 }
  0xef   : > { %v4660_v57 = vpop.f32.mrf.mxu0  ;;  %v4669_v7 = vpop.f32.mrf.mxu1 }
  0xf1   : > { %v4671_v16 = vpop.f32.mrf.mxu0  ;;  %3611 = vmatmul.mubr.msk.bf16.gmra.mxu0 %vm486_vm1, %v4456_v21  ;;  %v4677_v38 = vpop.f32.mrf.mxu1 }
  0xf2   : > { %3614 = vmatprep.mubr.msk.bf16.mxu0 %vm486_vm1, %v4667_v27 }
  0xf3   : > { %v4679_v63 = vpop.f32.mrf.mxu0  ;;  %v4681_v15 = vpop.f32.mrf.mxu1  ;;  %3577 = vmatmul.mubr.msk.bf16.gmra.mxu1 %vm486_vm1, %v4361_v10 }
  0xf4   : > { %3580 = vmatprep.mubr.msk.bf16.mxu1 %vm486_vm1, %v4350_v56 }
  0xf5   : > { %v4685_v0 = vpop.f32.mrf.mxu0  ;;  %v4689_v60 = vpop.f32.mrf.mxu1 }
  0xf7   : > { %v4691_v11 = vpop.f32.mrf.mxu0  ;;  %v4693_v43 = vpop.f32.mrf.mxu1 }
  0xf9   : > { %v4695_v18 = vpop.f32.mrf.mxu0  ;;  %3615 = vmatmul.mubr.msk.bf16.gmra.mxu0 %vm486_vm1, %v4483_v34  ;;  %v4701_v10 = vpop.f32.mrf.mxu1 }
  0xfa   : > { %3654 = vmatprep.mubr.msk.bf16.mxu0 %vm486_vm1, %v4374_v26 }
  0xfb   : > { %v4703_v22 = vpop.f32.mrf.mxu0  ;;  %v4705_v14 = vpop.f32.mrf.mxu1  ;;  %3581 = vmatmul.mubr.msk.bf16.gmra.mxu1 %vm486_vm1, %v4481_v17 }
  0xfc   : > { %3620 = vmatprep.mubr.msk.bf16.mxu1 %vm486_vm1, %v4366_v19 }
  0xfd   : > { %v4709_v56 = vpop.f32.mrf.mxu0  ;;  %v4713_v55 = vpop.f32.mrf.mxu1 }
  0xff   : > { %v4715_v24 = vpop.f32.mrf.mxu0  ;;  %v4717_v58 = vpop.f32.mrf.mxu1 }
 0x101   : > { %v3452_v20 = vpop.f32.mrf.mxu0  ;;  %3655 = vmatmul.mubr.msk.bf16.vlgmr.msra.gmra.mxu0 %vm486_vm1, %v4395_v35  ;;  %v4723_v1 = vpop.f32.mrf.mxu1 }
 0x102   : > { %3658 = vmatprep.mubr.msk.bf16.mxu0 %vm486_vm1, %v4381_v30 }
 0x103   : > { %v910_v17 = vpop.f32.mrf.mxu0  ;;  %v3418_v25 = vpop.f32.mrf.mxu1  ;;  %3621 = vmatmul.mubr.msk.bf16.vlgmr.msra.gmra.mxu1 %vm486_vm1, %v4374_v26 }
 0x104   : > { %v749_v45 = vadd.f32 %v3418_v25, %v3384_v37  ;;  %3624 = vmatprep.mubr.msk.bf16.mxu1 %vm486_vm1, %v4395_v35 }
 0x105   : > { %v3453_v19 = vpop.f32.mrf.mxu0  ;;  %v740_v40 = vpop.f32.mrf.mxu1 }
 0x106   : > { %v4729_v33 = vadd.f32 %v3452_v20, %v749_v45  ;;  %v741_v36 = vadd.f32 %v740_v40, %v573_v31 }
 0x107   : > { %v913_v6 = vpop.f32.mrf.mxu0  ;;  %v3419_v62 = vpop.f32.mrf.mxu1 }
 0x108   : > { %v4733_v46 = vadd.f32 %v910_v17, %v741_v36  ;;  %v752_v13 = vadd.f32 %v3419_v62, %v3385_v12 }
 0x109   : > { %v3456_v5 = vpop.f32.mrf.mxu0  ;;  %3659 = vmatmul.mubr.msk.bf16.gmra.mxu0 %vm486_vm1, %v4398_v49  ;;  %v743_v26 = vpop.f32.mrf.mxu1 }
 0x10a   : > { %3662 = vmatprep.mubr.msk.bf16.mxu0 %vm486_vm1, %v4388_v29  ;;  %v4737_v25 = vadd.f32 %v3453_v19, %v752_v13  ;;  %v744_v35 = vadd.f32 %v743_v26, %v4630_v39 }
 0x10b   : > { %v926_v37 = vpop.f32.mrf.mxu0  ;;  %v3422_v20 = vpop.f32.mrf.mxu1  ;;  %3625 = vmatmul.mubr.msk.bf16.gmra.mxu1 %vm486_vm1, %v4381_v30 }
 0x10c   : > { %v4742_v45 = vadd.f32 %v913_v6, %v744_v35  ;;  %v765_v17 = vadd.f32 %v3422_v20, %v4641_v50  ;;  %3628 = vmatprep.mubr.msk.bf16.mxu1 %vm486_vm1, %v4398_v49 }
 0x10d   : > { %v3457_v31 = vpop.f32.mrf.mxu0  ;;  %v756_v12 = vpop.f32.mrf.mxu1 }
 0x10e   : > { %v4747_v36 = vadd.f32 %v3456_v5, %v765_v17  ;;  %v757_v19 = vadd.f32 %v756_v12, %v4649_v32 }
 0x10f   : > { %v929_v40 = vpop.f32.mrf.mxu0  ;;  %v3423_v62 = vpop.f32.mrf.mxu1 }
 0x110   : > { %v4752_v30 = vadd.f32 %v926_v37, %v757_v19  ;;  %v768_v6 = vadd.f32 %v3423_v62, %v4655_v41 }
 0x111   : > { %v3460_v39 = vpop.f32.mrf.mxu0  ;;  %3663 = vmatmul.mubr.msk.bf16.gmra.mxu0 %vm486_vm1, %v4406_v61  ;;  %v759_v50 = vpop.f32.mrf.mxu1 }
 0x112   : > { %3666 = vmatprep.mubr.msk.bf16.mxu0 %vm486_vm1, %v4401_v44  ;;  %v4757_v13 = vadd.f32 %v3457_v31, %v768_v6  ;;  %v760_v5 = vadd.f32 %v759_v50, %v4660_v57 }
 0x113   : > { %v942_v49 = vpop.f32.mrf.mxu0  ;;  %v3426_v26 = vpop.f32.mrf.mxu1  ;;  %3629 = vmatmul.mubr.msk.bf16.gmra.mxu1 %vm486_vm1, %v4388_v29 }
 0x114   : > { %v4762_v35 = vadd.f32 %v929_v40, %v760_v5  ;;  %v781_v37 = vadd.f32 %v3426_v26, %v4671_v16  ;;  %3632 = vmatprep.mubr.msk.bf16.mxu1 %vm486_vm1, %v4406_v61 }
 0x115   : > { %v3461_v32 = vpop.f32.mrf.mxu0  ;;  %v772_v41 = vpop.f32.mrf.mxu1 }
 0x116   : > { %v4767_v17 = vadd.f32 %v3460_v39, %v781_v37  ;;  %v773_v31 = vadd.f32 %v772_v41, %v4679_v63 }
 0x117   : > { %v945_v20 = vpop.f32.mrf.mxu0  ;;  %v3427_v12 = vpop.f32.mrf.mxu1 }
 0x118   : > { %v4772_v29 = vadd.f32 %v942_v49, %v773_v31  ;;  %v784_v40 = vadd.f32 %v3427_v12, %v4685_v0 }
 0x119   : > { %v3464_v57 = vpop.f32.mrf.mxu0  ;;  %3667 = vmatmul.mubr.msk.bf16.gmra.mxu0 %vm486_vm1, %v4414_v3  ;;  %v775_v16 = vpop.f32.mrf.mxu1 }
 0x11a   : > { %3670 = vmatprep.mubr.msk.bf16.mxu0 %vm486_vm1, %v4617_v48  ;;  %v4777_v19 = vadd.f32 %v3461_v32, %v784_v40  ;;  %v776_v62 = vadd.f32 %v775_v16, %v4691_v11 }
 0x11b   : > { %v958_v61 = vpop.f32.mrf.mxu0  ;;  %v3430_v39 = vpop.f32.mrf.mxu1  ;;  %3633 = vmatmul.mubr.msk.bf16.gmra.mxu1 %vm486_vm1, %v4401_v44 }
 0x11c   : > { %v4782_v6 = vadd.f32 %v945_v20, %v776_v62  ;;  %v797_v50 = vadd.f32 %v3430_v39, %v4695_v18  ;;  %3636 = vmatprep.mubr.msk.bf16.mxu1 %vm486_vm1, %v4414_v3 }
 0x11d   : > { %v3465_v63 = vpop.f32.mrf.mxu0  ;;  %v788_v0 = vpop.f32.mrf.mxu1 }
 0x11e   : > { %v4787_v5 = vadd.f32 %v3464_v57, %v797_v50  ;;  %v789_v26 = vadd.f32 %v788_v0, %v4703_v22 }
 0x11f   : > { %v961_v49 = vpop.f32.mrf.mxu0  ;;  %v3431_v32 = vpop.f32.mrf.mxu1 }
 0x120   : > { %v4792_v44 = vadd.f32 %v958_v61, %v789_v26  ;;  %v800_v37 = vadd.f32 %v3431_v32, %v4709_v56 }
 0x121   : > { %v3468_v11 = vpop.f32.mrf.mxu0  ;;  %3671 = vmatmul.mubr.msk.bf16.gmra.mxu0 %vm486_vm1, %v4432_v47  ;;  %v791_v18 = vpop.f32.mrf.mxu1 }
 0x122   : > { %3674 = vmatprep.mubr.msk.bf16.mxu0 %vm486_vm1, %v4637_v51  ;;  %v4797_v41 = vadd.f32 %v3465_v63, %v800_v37  ;;  %v792_v20 = vadd.f32 %v791_v18, %v4715_v24 }
 0x123   : > { %v974_v3 = vpop.f32.mrf.mxu0  ;;  %v3434_v31 = vpop.f32.mrf.mxu1  ;;  %3637 = vmatmul.mubr.msk.bf16.gmra.mxu1 %vm486_vm1, %v4617_v48 }
 0x124   : > { %v4802_v12 = vadd.f32 %v961_v49, %v792_v20  ;;  %v813_v57 = vadd.f32 %v3434_v31, %v4623_v2  ;;  %3640 = vmatprep.mubr.msk.bf16.mxu1 %vm486_vm1, %v4432_v47 }
 0x125   : > { %v3469_v22 = vpop.f32.mrf.mxu0  ;;  %v804_v56 = vpop.f32.mrf.mxu1 }
 0x126   : > { %v4807_v16 = vadd.f32 %v3468_v11, %v813_v57  ;;  %v805_v61 = vadd.f32 %v804_v56, %v4628_v23 }
 0x127   : > { %v977_v40 = vpop.f32.mrf.mxu0  ;;  %v3435_v62 = vpop.f32.mrf.mxu1 }
 0x128   : > { %v4812_v48 = vadd.f32 %v974_v3, %v805_v61  ;;  %v816_v39 = vadd.f32 %v3435_v62, %v4639_v53 }
 0x129   : > { %v3472_v24 = vpop.f32.mrf.mxu0  ;;  %3675 = vmatmul.mubr.msk.bf16.gmra.mxu0 %vm486_vm1, %v4456_v21  ;;  %v807_v2 = vpop.f32.mrf.mxu1 }
 0x12a   : > { %3678 = vmatprep.mubr.msk.bf16.mxu0 %vm486_vm1, %v4667_v27  ;;  %v4817_v63 = vadd.f32 %v3469_v22, %v816_v39  ;;  %v808_v50 = vadd.f32 %v807_v2, %v4647_v8  ;;  %v2035_v8 = vsel %vm1984_vm2, %v2032_v4, %v2034_v28 }
 0x12b   : > { %v990_v47 = vpop.f32.mrf.mxu0  ;;  %v3438_v0 = vpop.f32.mrf.mxu1  ;;  %3641 = vmatmul.mubr.msk.bf16.gmra.mxu1 %vm486_vm1, %v4637_v51 }
 0x12c   : > { %v4822_v49 = vadd.f32 %v977_v40, %v808_v50  ;;  %v829_v26 = vadd.f32 %v3438_v0, %v4651_v54  ;;  %3644 = vmatprep.mubr.msk.bf16.mxu1 %vm486_vm1, %v4456_v21 }
 0x12d   : > { %v3473_v23 = vpop.f32.mrf.mxu0  ;;  %v820_v53 = vpop.f32.mrf.mxu1 }
 0x12e   : > { %v4832_v11 = vadd.f32 %v3472_v24, %v829_v26  ;;  %v821_v51 = vadd.f32 %v820_v53, %v4658_v9 }
 0x12f   : > { %v993_v32 = vpop.f32.mrf.mxu0  ;;  %v3439_v37 = vpop.f32.mrf.mxu1 }
 0x130   : > { %v4837_v54 = vadd.f32 %v990_v47, %v821_v51  ;;  %v832_v21 = vadd.f32 %v3439_v37, %v4669_v7 }
 0x131   : > { %v3476_v18 = vpop.f32.mrf.mxu0  ;;  %3679 = vmatmul.mubr.msk.bf16.gmra.mxu0 %vm486_vm1, %v4483_v34  ;;  %v823_v52 = vpop.f32.mrf.mxu1 }
 0x132   : > { %3682 = vmatprep.mubr.msk.bf16.mxu0 %vm486_vm1, %v2035_v8  ;;  %v4841_v59 = vadd.f32 %v3473_v23, %v832_v21  ;;  %v824_v4 = vadd.f32 %v823_v52, %v4677_v38 }
 0x133   : > { %v1006_v3 = vpop.f32.mrf.mxu0  ;;  %v3442_v28 = vpop.f32.mrf.mxu1  ;;  %3645 = vmatmul.mubr.msk.bf16.gmra.mxu1 %vm486_vm1, %v4667_v27 }
 0x134   : > { %v4846_v20 = vadd.f32 %v993_v32, %v824_v4  ;;  %v845_v31 = vadd.f32 %v3442_v28, %v4681_v15  ;;  %3648 = vmatprep.mubr.msk.bf16.mxu1 %vm486_vm1, %v4483_v34 }
 0x135   : > { %v3477_v9 = vpop.f32.mrf.mxu0  ;;  %v836_v7 = vpop.f32.mrf.mxu1 }
 0x136   : > { %v4851_v57 = vadd.f32 %v3476_v18, %v845_v31  ;;  %v837_v56 = vadd.f32 %v836_v7, %v4689_v60 }
 0x137   : > { %v1009_v22 = vpop.f32.mrf.mxu0  ;;  %v3443_v40 = vpop.f32.mrf.mxu1 }
 0x138   : > { %v4856_v27 = vadd.f32 %v1006_v3, %v837_v56  ;;  %v848_v61 = vadd.f32 %v3443_v40, %v4693_v43 }
 0x139   : > { %v3480_v38 = vpop.f32.mrf.mxu0  ;;  %3683 = vmatmul.mubr.msk.bf16.gmra.mxu0 %vm486_vm1, %v4573_v42  ;;  %v839_v62 = vpop.f32.mrf.mxu1 }
 0x13a   : > { %v4859_v24 = vadd.f32 %v3477_v9, %v848_v61  ;;  %v840_v34 = vadd.f32 %v839_v62, %v4701_v10 }
 0x13b   : > { %v1022_v15 = vpop.f32.mrf.mxu0  ;;  %v3446_v39 = vpop.f32.mrf.mxu1  ;;  %3649 = vmatmul.mubr.msk.bf16.gmra.mxu1 %vm486_vm1, %v2035_v8 }
 0x13c   : > { %v4863_v60 = vadd.f32 %v1009_v22, %v840_v34  ;;  %v861_v47 = vadd.f32 %v3446_v39, %v4705_v14 }
 0x13d   : > { %v3481_v2 = vpop.f32.mrf.mxu0  ;;  %v852_v50 = vpop.f32.mrf.mxu1 }
 0x13e   : > { %v4866_v0 = vadd.f32 %v3480_v38, %v861_v47  ;;  %v853_v43 = vadd.f32 %v852_v50, %v4713_v55 }
 0x13f   : > { %v1025_v42 = vpop.f32.mrf.mxu0  ;;  %v3447_v23 = vpop.f32.mrf.mxu1 }
 0x140   : > { %v4869_v53 = vadd.f32 %v1022_v15, %v853_v43  ;;  %v864_v10 = vadd.f32 %v3447_v23, %v4717_v58 }
 0x141   : > { %v3520_v26 = vpop.f32.mrf.mxu0  ;;  %v855_v32 = vpop.f32.mrf.mxu1 }
 0x142   : > { %v4872_v8 = vadd.f32 %v3481_v2, %v864_v10  ;;  %v856_v37 = vadd.f32 %v855_v32, %v4723_v1 }
 0x143   : > { %v1623_v51 = vpop.f32.mrf.mxu0  ;;  %v3486_v18 = vpop.f32.mrf.mxu1 }
 0x144   : > { %v4875_v21 = vadd.f32 %v1025_v42, %v856_v37  ;;  %v1550_v52 = vadd.f32 %v3486_v18, %v4729_v33 }
 0x145   : > { %v3521_v14 = vpop.f32.mrf.mxu0  ;;  %v1421_v3 = vpop.f32.mrf.mxu1 }
 0x146   : > { %v4878_v4 = vadd.f32 %v3520_v26, %v1550_v52  ;;  %v1548_v28 = vadd.f32 %v1421_v3, %v4733_v46 }
 0x147   : > { %v1626_v55 = vpop.f32.mrf.mxu0  ;;  %v3487_v9 = vpop.f32.mrf.mxu1 }
 0x148   : > { %v4881_v31 = vadd.f32 %v1623_v51, %v1548_v28  ;;  %v1551_v7 = vadd.f32 %v3487_v9, %v4737_v25 }
 0x149   : > { %v3524_v58 = vpop.f32.mrf.mxu0  ;;  %v1424_v22 = vpop.f32.mrf.mxu1 }
 0x14a   : > { %v4884_v56 = vadd.f32 %v3521_v14, %v1551_v7  ;;  %v1549_v40 = vadd.f32 %v1424_v22, %v4742_v45 }
 0x14b   : > { %v1639_v1 = vpop.f32.mrf.mxu0  ;;  %v3490_v38 = vpop.f32.mrf.mxu1 }
 0x14c   : > { %v4887_v61 = vadd.f32 %v1626_v55, %v1549_v40  ;;  %v1554_v62 = vadd.f32 %v3490_v38, %v4747_v36 }
 0x14d   : > { %v3525_v33 = vpop.f32.mrf.mxu0  ;;  %v1437_v15 = vpop.f32.mrf.mxu1 }
 0x14e   : > { %v4890_v34 = vadd.f32 %v3524_v58, %v1554_v62  ;;  %v1552_v39 = vadd.f32 %v1437_v15, %v4752_v30 }
 0x14f   : > { %v1642_v46 = vpop.f32.mrf.mxu0  ;;  %v3491_v2 = vpop.f32.mrf.mxu1 }
 0x150   : > { %v4893_v47 = vadd.f32 %v1639_v1, %v1552_v39  ;;  %v1555_v50 = vadd.f32 %v3491_v2, %v4757_v13 }
 0x151   : > { %v3528_v25 = vpop.f32.mrf.mxu0  ;;  %v1440_v42 = vpop.f32.mrf.mxu1 }
 0x152   : > { %v4896_v43 = vadd.f32 %v3525_v33, %v1555_v50  ;;  %v1553_v23 = vadd.f32 %v1440_v42, %v4762_v35 }
 0x153   : > { %v1655_v45 = vpop.f32.mrf.mxu0  ;;  %v3494_v26 = vpop.f32.mrf.mxu1 }
 0x154   : > { %v4899_v10 = vadd.f32 %v1642_v46, %v1553_v23  ;;  %v1558_v32 = vadd.f32 %v3494_v26, %v4767_v17 }
 0x155   : > { %v3529_v36 = vpop.f32.mrf.mxu0  ;;  %v1453_v51 = vpop.f32.mrf.mxu1 }
 0x156   : > { %v4902_v37 = vadd.f32 %v3528_v25, %v1558_v32  ;;  %v1556_v18 = vadd.f32 %v1453_v51, %v4772_v29 }
 0x157   : > { %v1658_v30 = vpop.f32.mrf.mxu0  ;;  %v3495_v14 = vpop.f32.mrf.mxu1 }
 0x158   : > { %v4905_v52 = vadd.f32 %v1655_v45, %v1556_v18  ;;  %v1559_v3 = vadd.f32 %v3495_v14, %v4777_v19 }
 0x159   : > { %v3532_v13 = vpop.f32.mrf.mxu0  ;;  %v1456_v55 = vpop.f32.mrf.mxu1 }
 0x15a   : > { %v4908_v28 = vadd.f32 %v3529_v36, %v1559_v3  ;;  %v1557_v9 = vadd.f32 %v1456_v55, %v4782_v6 }
 0x15b   : > { %v1671_v35 = vpop.f32.mrf.mxu0  ;;  %v3498_v58 = vpop.f32.mrf.mxu1 }
 0x15c   : > { %v4911_v7 = vadd.f32 %v1658_v30, %v1557_v9  ;;  %v1562_v22 = vadd.f32 %v3498_v58, %v4787_v5 }
 0x15d   : > { %v3533_v17 = vpop.f32.mrf.mxu0  ;;  %v1469_v1 = vpop.f32.mrf.mxu1 }
 0x15e   : > { %v4914_v40 = vadd.f32 %v3532_v13, %v1562_v22  ;;  %v1560_v38 = vadd.f32 %v1469_v1, %v4792_v44 }
 0x15f   : > { %v1674_v29 = vpop.f32.mrf.mxu0  ;;  %v3499_v33 = vpop.f32.mrf.mxu1 }
 0x160   : > { %v4917_v62 = vadd.f32 %v1671_v35, %v1560_v38  ;;  %v1563_v15 = vadd.f32 %v3499_v33, %v4797_v41 }
 0x161   : > { %v3536_v19 = vpop.f32.mrf.mxu0  ;;  %v1472_v46 = vpop.f32.mrf.mxu1 }
 0x162   : > { %v4920_v39 = vadd.f32 %v3533_v17, %v1563_v15  ;;  %v1561_v2 = vadd.f32 %v1472_v46, %v4802_v12 }
 0x163   : > { %v1687_v6 = vpop.f32.mrf.mxu0  ;;  %v3502_v25 = vpop.f32.mrf.mxu1 }
 0x164   : > { %v4923_v50 = vadd.f32 %v1674_v29, %v1561_v2  ;;  %v1566_v42 = vadd.f32 %v3502_v25, %v4807_v16 }
 0x165   : > { %v3537_v5 = vpop.f32.mrf.mxu0  ;;  %v1485_v45 = vpop.f32.mrf.mxu1 }
 0x166   : > { %v4926_v23 = vadd.f32 %v3536_v19, %v1566_v42  ;;  %v1564_v26 = vadd.f32 %v1485_v45, %v4812_v48 }
 0x167   : > { %v1690_v44 = vpop.f32.mrf.mxu0  ;;  %v3503_v36 = vpop.f32.mrf.mxu1 }
 0x168   : > { %v4929_v32 = vadd.f32 %v1687_v6, %v1564_v26  ;;  %v1567_v51 = vadd.f32 %v3503_v36, %v4817_v63 }
 0x169   : > { %v3540_v41 = vpop.f32.mrf.mxu0  ;;  %v1488_v30 = vpop.f32.mrf.mxu1 }
 0x16a   : > { %v4932_v18 = vadd.f32 %v3537_v5, %v1567_v51  ;;  %v1565_v14 = vadd.f32 %v1488_v30, %v4822_v49 }
 0x16b   : > { %v1703_v12 = vpop.f32.mrf.mxu0  ;;  %v3506_v13 = vpop.f32.mrf.mxu1 }
 0x16c   : > { %5403 = vst [vmem:[#allocation6_spill] sm:$0xff] %v4932_v18  ;;  %v4935_v3 = vadd.f32 %v1690_v44, %v1565_v14  ;;  %v1570_v55 = vadd.f32 %v3506_v13, %v4832_v11 }
 0x16d   : > { %v3541_v16 = vpop.f32.mrf.mxu0  ;;  %v1501_v35 = vpop.f32.mrf.mxu1 }
 0x16e   : > { %5404 = vst [vmem:[#allocation7_spill] sm:$0xff] %v4935_v3  ;;  %v4938_v9 = vadd.f32 %v3540_v41, %v1570_v55  ;;  %v1568_v58 = vadd.f32 %v1501_v35, %v4837_v54 }
 0x16f   : > { %v1706_v48 = vpop.f32.mrf.mxu0  ;;  %v3507_v17 = vpop.f32.mrf.mxu1 }
 0x170   : > { %5405 = vst [vmem:[#allocation8_spill] sm:$0xff] %v4938_v9  ;;  %v4941_v22 = vadd.f32 %v1703_v12, %v1568_v58  ;;  %v1571_v1 = vadd.f32 %v3507_v17, %v4841_v59 }
 0x171   : > { %v3544_v63 = vpop.f32.mrf.mxu0  ;;  %v1504_v29 = vpop.f32.mrf.mxu1 }
 0x172   : > { %5406 = vst [vmem:[#allocation9_spill] sm:$0xff] %v4941_v22  ;;  %v4944_v38 = vadd.f32 %v3541_v16, %v1571_v1  ;;  %v1569_v33 = vadd.f32 %v1504_v29, %v4846_v20 }
 0x173   : > { %v1719_v49 = vpop.f32.mrf.mxu0  ;;  %v3510_v19 = vpop.f32.mrf.mxu1 }
 0x174   : > { %5407 = vst [vmem:[#allocation13_spill] sm:$0xff] %v4944_v38  ;;  %v4947_v15 = vadd.f32 %v1706_v48, %v1569_v33  ;;  %v1574_v46 = vadd.f32 %v3510_v19, %v4851_v57 }
 0x175   : > { %v3545_v11 = vpop.f32.mrf.mxu0  ;;  %v1517_v6 = vpop.f32.mrf.mxu1 }
 0x176   : > { %5408 = vst [vmem:[#allocation10_spill] sm:$0xff] %v4947_v15  ;;  %v4950_v2 = vadd.f32 %v3544_v63, %v1574_v46  ;;  %v1572_v25 = vadd.f32 %v1517_v6, %v4856_v27 }
 0x177   : > { %v1722_v54 = vpop.f32.mrf.mxu0  ;;  %v3511_v5 = vpop.f32.mrf.mxu1 }
 0x178   : > { %5409 = vst [vmem:[#allocation11_spill] sm:$0xff] %v4950_v2  ;;  %v4953_v42 = vadd.f32 %v1719_v49, %v1572_v25  ;;  %v1575_v45 = vadd.f32 %v3511_v5, %v4859_v24 }
 0x179   : > { %v3548_v59 = vpop.f32.mrf.mxu0  ;;  %v1520_v44 = vpop.f32.mrf.mxu1 }
 0x17a   : > { %5410 = vst [vmem:[#allocation15_spill] sm:$0xff] %v4953_v42  ;;  %v4956_v26 = vadd.f32 %v3545_v11, %v1575_v45  ;;  %v1573_v36 = vadd.f32 %v1520_v44, %v4863_v60 }
 0x17b   : > { %v1735_v20 = vpop.f32.mrf.mxu0  ;;  %v3514_v41 = vpop.f32.mrf.mxu1 }
 0x17c   : > { %5411 = vst [vmem:[#allocation12_spill] sm:$0xff] %v4956_v26  ;;  %v4959_v51 = vadd.f32 %v1722_v54, %v1573_v36  ;;  %v1578_v30 = vadd.f32 %v3514_v41, %v4866_v0 }
 0x17d   : > { %v3549_v57 = vpop.f32.mrf.mxu0  ;;  %v1533_v12 = vpop.f32.mrf.mxu1 }
 0x17e   : > { %5412 = vst [vmem:[#allocation14_spill] sm:$0xff] %v4959_v51  ;;  %v4962_v14 = vadd.f32 %v3548_v59, %v1578_v30  ;;  %v1576_v13 = vadd.f32 %v1533_v12, %v4869_v53 }
 0x17f   : > { %v1738_v27 = vpop.f32.mrf.mxu0  ;;  %v3515_v16 = vpop.f32.mrf.mxu1 }
 0x180   : > { %5413 = vst [vmem:[#allocation16_spill] sm:$0xff] %v4962_v14  ;;  %v4967_v55 = vadd.f32 %v1735_v20, %v1576_v13  ;;  %v1579_v35 = vadd.f32 %v3515_v16, %v4872_v8 }
 0x181   : > { %v4965_v24 = vpop.f32.mrf.mxu0  ;;  %v1536_v60 = vpop.f32.mrf.mxu1 }
 0x182   : > { %5414 = vst [vmem:[#allocation17_spill] sm:$0xff] %v4967_v55  ;;  %v4972_v58 = vadd.f32 %v3549_v57, %v1579_v35  ;;  %v1577_v0 = vadd.f32 %v1536_v60, %v4875_v21 }
 0x183   : > { %v4970_v48 = vpop.f32.mrf.mxu0  ;;  %v3554_v17 = vpop.f32.mrf.mxu1 }
 0x184   : > { %5415 = vst [vmem:[#allocation18_spill] sm:$0xff] %v4972_v58  ;;  %v4977_v1 = vadd.f32 %v1738_v27, %v1577_v0 }
 0x185   : > { %v4975_v63 = vpop.f32.mrf.mxu0  ;;  %v1825_v53 = vpop.f32.mrf.mxu1 }
 0x186   : > { %5416 = vst [vmem:[#allocation19_spill] sm:$0xff] %v4977_v1 }
 0x187   : > { %v4979_v29 = vpop.f32.mrf.mxu0  ;;  %v4981_v49 = vpop.f32.mrf.mxu1 }
 0x189   : > { %v4983_v33 = vpop.f32.mrf.mxu0  ;;  %v4985_v8 = vpop.f32.mrf.mxu1 }
 0x18b   : > { %v4987_v19 = vpop.f32.mrf.mxu0  ;;  %v4989_v11 = vpop.f32.mrf.mxu1 }
 0x18d   : > { %v4991_v46 = vpop.f32.mrf.mxu0  ;;  %v4993_v21 = vpop.f32.mrf.mxu1 }
 0x18f   : > { %v4995_v6 = vpop.f32.mrf.mxu0  ;;  %v4997_v54 = vpop.f32.mrf.mxu1 }
 0x191   : > { %v4999_v25 = vpop.f32.mrf.mxu0  ;;  %v5001_v5 = vpop.f32.mrf.mxu1 }
 0x193   : > { %v5003_v59 = vpop.f32.mrf.mxu0  ;;  %v5005_v45 = vpop.f32.mrf.mxu1 }
 0x195   : > { %v5007_v44 = vpop.f32.mrf.mxu0  ;;  %v5009_v20 = vpop.f32.mrf.mxu1 }
 0x197   : > { %v5011_v36 = vpop.f32.mrf.mxu0  ;;  %v5013_v41 = vpop.f32.mrf.mxu1 }
 0x199   : > { %v5015_v57 = vpop.f32.mrf.mxu0  ;;  %v5017_v30 = vpop.f32.mrf.mxu1 }
 0x19b   : > { %v5019_v12 = vpop.f32.mrf.mxu0  ;;  %v5021_v27 = vpop.f32.mrf.mxu1 }
 0x19d   : > { %v5023_v13 = vpop.f32.mrf.mxu0  ;;  %v5025_v16 = vpop.f32.mrf.mxu1 }
 0x19f   : > { %v5027_v35 = vpop.f32.mrf.mxu0  ;;  %v5029_v60 = vpop.f32.mrf.mxu1 }
 0x1a1   : > { %v5031_v0 = vpop.f32.mrf.mxu0  ;;  %v5033_v1 = vpop.f32.mrf.mxu1 }
 0x1a3   : > { %v5035_v58 = vpop.f32.mrf.mxu0  ;;  %v5037_v55 = vpop.f32.mrf.mxu1 }
 0x1a4   : > { %5417 = vst [vmem:[#allocation20_spill] sm:$0xff] %v5035_v58 }
 0x1a5   : > { %v5039_v14 = vpop.f32.mrf.mxu0  ;;  %v5041_v51 = vpop.f32.mrf.mxu1 }
 0x1a6   : > { %5418 = vst [vmem:[#allocation21_spill] sm:$0xff] %v5039_v14 }
 0x1a7   : > { %v5043_v26 = vpop.f32.mrf.mxu0  ;;  %v5045_v42 = vpop.f32.mrf.mxu1 }
 0x1a8   : > { %5419 = vst [vmem:[#allocation22_spill] sm:$0xff] %v5043_v26  ;;  %5420 = vst [vmem:[#allocation23_spill] sm:$0xff] %v5045_v42 }
 0x1a9   : > { %v5047_v2 = vpop.f32.mrf.mxu0  ;;  %v5049_v15 = vpop.f32.mrf.mxu1 }
 0x1aa   : > { %5421 = vst [vmem:[#allocation24_spill] sm:$0xff] %v5047_v2  ;;  %5422 = vst [vmem:[#allocation25_spill] sm:$0xff] %v5049_v15 }
 0x1ab   : > { %v5051_v38 = vpop.f32.mrf.mxu0  ;;  %v5053_v22 = vpop.f32.mrf.mxu1 }
 0x1ac   : > { %5423 = vst [vmem:[#allocation26_spill] sm:$0xff] %v5051_v38  ;;  %5424 = vst [vmem:[#allocation27_spill] sm:$0xff] %v5053_v22 }
 0x1ad   : > { %v5055_v9 = vpop.f32.mrf.mxu0  ;;  %v5057_v58 = vpop.f32.mrf.mxu1 }
 0x1ae   : > { %5425 = vst [vmem:[#allocation28_spill] sm:$0xff] %v5055_v9  ;;  %5426 = vst [vmem:[#allocation29_spill] sm:$0xff] %v5057_v58 }
 0x1af   : > { %v5059_v3 = vpop.f32.mrf.mxu0  ;;  %v5061_v14 = vpop.f32.mrf.mxu1 }
 0x1b0   : > { %5427 = vst [vmem:[#allocation30_spill] sm:$0xff] %v5059_v3  ;;  %5428 = vst [vmem:[#allocation31_spill] sm:$0xff] %v5061_v14 }
 0x1b1   : > { %v5063_v18 = vpop.f32.mrf.mxu0  ;;  %v5065_v26 = vpop.f32.mrf.mxu1 }
 0x1b2   : > { %5429 = vst [vmem:[#allocation32_spill] sm:$0xff] %v5063_v18  ;;  %5430 = vst [vmem:[#allocation33_spill] sm:$0xff] %v5065_v26 }
 0x1b3   : > { %v5067_v42 = vpop.f32.mrf.mxu0  ;;  %v5069_v2 = vpop.f32.mrf.mxu1 }
 0x1b4   : > { %5431 = vst [vmem:[#allocation34_spill] sm:$0xff] %v5067_v42  ;;  %5432 = vst [vmem:[#allocation35_spill] sm:$0xff] %v5069_v2 }
 0x1b5   : > { %v5071_v15 = vpop.f32.mrf.mxu0  ;;  %v5073_v38 = vpop.f32.mrf.mxu1 }
 0x1b6   : > { %5433 = vst [vmem:[#allocation36_spill] sm:$0xff] %v5071_v15  ;;  %5434 = vst [vmem:[#allocation37_spill] sm:$0xff] %v5073_v38  ;;  %v1954_v38 = vadd.f32 %v3554_v17, %v4878_v4  ;;  %v1953_v17 = vadd.f32 %v4985_v8, %v4887_v61  ;;  %v1959_v61 = vadd.f32 %v4997_v54, %v4896_v43 }
 0x1b7   : > { %v5075_v22 = vpop.f32.mrf.mxu0  ;;  %v5077_v9 = vpop.f32.mrf.mxu1 }
 0x1b8   : > { %5435 = vst [vmem:[#allocation38_spill] sm:$0xff] %v5075_v22  ;;  %5436 = vst [vmem:[#allocation39_spill] sm:$0xff] %v5077_v9 }
 0x1b9   : > { %v5079_v58 = vpop.f32.mrf.mxu0  ;;  %v5081_v3 = vpop.f32.mrf.mxu1 }
 0x1ba   : > { %5437 = vst [vmem:[#allocation40_spill] sm:$0xff] %v5079_v58  ;;  %5438 = vst [vmem:[#allocation41_spill] sm:$0xff] %v5081_v3  ;;  %v1952_v58 = vadd.f32 %v1825_v53, %v4881_v31  ;;  %v1958_v31 = vadd.f32 %v4989_v11, %v4890_v34  ;;  %v1956_v53 = vadd.f32 %v4993_v21, %v4893_v47  ;;  %v5120_v34 = vstv %s2784_s19 }
 0x1bb   : > { %v5083_v14 = vpop.f32.mrf.mxu0  ;;  %v5085_v18 = vpop.f32.mrf.mxu1  ;;  %v2310_v21 = vadd.f32 %v4979_v29, %v1953_v17  ;;  %v1962_v29 = vadd.f32 %v5005_v45, %v4902_v37 }
 0x1bc   : > { %5439 = vst [vmem:[#allocation42_spill] sm:$0xff] %v5083_v14  ;;  %5440 = vst [vmem:[#allocation43_spill] sm:$0xff] %v5085_v18  ;;  %v2311_v18 = vadd.f32 %v4965_v24, %v1954_v38 }
 0x1bd   : > { %v5087_v26 = vpop.f32.mrf.mxu0  ;;  %v5089_v42 = vpop.f32.mrf.mxu1 }
 0x1be   : > { %5441 = vst [vmem:[#allocation44_spill] sm:$0xff] %v5087_v26  ;;  %5442 = vst [vmem:[#allocation45_spill] sm:$0xff] %v5089_v42  ;;  %v1955_v26 = vadd.f32 %v4981_v49, %v4884_v56  ;;  %v5113_v56 = vld [vmem:[%s5358_s3] ss:$0 sm:$0xff] }
 0x1bf   : > { %v5091_v15 = vpop.f32.mrf.mxu0  ;;  %v5094_v22 = vpop.f32.mrf.mxu1 }
 0x1c0   : > { %5443 = vst [vmem:[#allocation46_spill] sm:$0xff] %v5091_v15  ;;  %v2309_v15 = vadd.f32 %v4970_v48, %v1952_v58  ;;  %v2312_v48 = vadd.f32 %v4975_v63, %v1955_v26 }
 0x1c1   : > { %v3656_v9 = vpop.f32.mrf.mxu0  ;;  %v5097_v3 = vpop.f32.mrf.mxu1 }
 0x1c2   : > { %5444 = vst [vmem:[#allocation47_spill] sm:$0xff] %v5097_v3  ;;  %v2315_v3 = vadd.f32 %v4983_v33, %v1958_v31 }
 0x1c3   : > { %v2586_v14 = vpop.f32.mrf.mxu0  ;;  %v3622_v42 = vpop.f32.mrf.mxu1 }
 0x1c4   : > { %v2513_v4 = vadd.f32 %v3622_v42, %v2311_v18 }
 0x1c5   : > { %v3657_v2 = vpop.f32.mrf.mxu0  ;;  %v2384_v38 = vpop.f32.mrf.mxu1 }
 0x1c6   : > { %v2715_v18 = vadd.f32 %v3656_v9, %v2513_v4  ;;  %v2511_v42 = vadd.f32 %v2384_v38, %v2309_v15  ;;  %v2313_v9 = vadd.f32 %v4987_v19, %v1956_v53  ;;  %v2316_v4 = vadd.f32 %v4991_v46, %v1959_v61 }
 0x1c7   : > { %v2589_v24 = vpop.f32.mrf.mxu0  ;;  %v3623_v58 = vpop.f32.mrf.mxu1  ;;  %v1963_v46 = vadd.f32 %v5013_v41, %v4908_v28  ;;  %v1961_v28 = vadd.f32 %v5017_v30, %v4911_v7 }
 0x1c8   : > { %v2754_v49 = vadd.f32 %v5113_v56, %v2715_v18  ;;  %v2713_v8 = vadd.f32 %v2586_v14, %v2511_v42  ;;  %v2514_v11 = vadd.f32 %v3623_v58, %v2312_v48  ;;  %v1957_v14 = vadd.f32 %v5001_v5, %v4899_v10 }
 0x1c9   : > { %v3660_v47 = vpop.f32.mrf.mxu0  ;;  %v2387_v15 = vpop.f32.mrf.mxu1 }
 0x1ca   : > { %vm2787_vm6 = vcmp.gt.f32.partialorder %v2754_v49, 0.0  ;;  %v2820_v43 = vmul.f32 %v5120_v34, %v2754_v49  ;;  %v2752_v63 = vadd.f32 %v5113_v56, %v2713_v8  ;;  %v2716_v54 = vadd.f32 %v3657_v2, %v2514_v11 }
 0x1cb   : > { %v2602_v26 = vpop.f32.mrf.mxu0  ;;  %v2512_v17 = vadd.f32 %v2387_v15, %v2310_v21  ;;  %v3626_v33 = vpop.f32.mrf.mxu1  ;;  %v1960_v2 = vadd.f32 %v5009_v20, %v4905_v52  ;;  %v2314_v52 = vadd.f32 %v4995_v6, %v1957_v14 }
 0x1cc   : > { %v2852_v19 = vsel %vm2787_vm6, %v2754_v49, %v2820_v43  ;;  %vm2785_vm7 = vcmp.gt.f32.partialorder %v2752_v63, 0.0  ;;  %v2818_v53 = vmul.f32 %v5120_v34, %v2752_v63  ;;  %v2755_v38 = vadd.f32 %v5113_v56, %v2716_v54 }
 0x1cd   : > { %v3661_v31 = vpop.f32.mrf.mxu0  ;;  %2884 = vst [vmem:[%s5139_s8 + $0x10] sm:$0xff] %v2852_v19  ;;  %v2714_v10 = vadd.f32 %v2589_v24, %v2512_v17  ;;  %v2517_v37 = vadd.f32 %v3626_v33, %v2315_v3  ;;  %v2400_v5 = vpop.f32.mrf.mxu1  ;;  %v2319_v3 = vadd.f32 %v4999_v25, %v1962_v29  ;;  %v2317_v11 = vadd.f32 %v5003_v59, %v1960_v2 }
 0x1ce   : > { %v2850_v48 = vsel %vm2785_vm7, %v2752_v63, %v2818_v53  ;;  %vm2788_vm8 = vcmp.gt.f32.partialorder %v2755_v38, 0.0  ;;  %v2821_v18 = vmul.f32 %v5120_v34, %v2755_v38  ;;  %v2515_v42 = vadd.f32 %v2400_v5, %v2313_v9 }
 0x1cf   : > { %v2605_v45 = vpop.f32.mrf.mxu0  ;;  %2882 = vst [vmem:[%s5139_s8] sm:$0xff] %v2850_v48  ;;  %v2753_v20 = vadd.f32 %v5113_v56, %v2714_v10  ;;  %v2719_v41 = vadd.f32 %v3660_v47, %v2517_v37  ;;  %v3627_v61 = vpop.f32.mrf.mxu1  ;;  %v2320_v47 = vadd.f32 %v5007_v44, %v1963_v46  ;;  %v1966_v29 = vadd.f32 %v5021_v27, %v4914_v40 }
 0x1d0   : > { %v2853_v58 = vsel %vm2788_vm8, %v2755_v38, %v2821_v18  ;;  %v2717_v49 = vadd.f32 %v2602_v26, %v2515_v42  ;;  %v2518_v8 = vadd.f32 %v3627_v61, %v2316_v4  ;;  %v2318_v26 = vadd.f32 %v5011_v36, %v1961_v28 }
 0x1d1   : > { %v3664_v24 = vpop.f32.mrf.mxu0  ;;  %2885 = vst [vmem:[%s5139_s8 + $0x18] sm:$0xff] %v2853_v58  ;;  %vm2786_vm9 = vcmp.gt.f32.partialorder %v2753_v20, 0.0  ;;  %v2819_v6 = vmul.f32 %v5120_v34, %v2753_v20  ;;  %v2758_v7 = vadd.f32 %v5113_v56, %v2719_v41  ;;  %v2403_v30 = vpop.f32.mrf.mxu1  ;;  %v1964_v36 = vadd.f32 %v5025_v16, %v4917_v62 }
 0x1d2   : > { %v2756_v9 = vadd.f32 %v5113_v56, %v2717_v49  ;;  %v2720_v15 = vadd.f32 %v3661_v31, %v2518_v8  ;;  %v2516_v25 = vadd.f32 %v2403_v30, %v2314_v52  ;;  %v1967_v46 = vadd.f32 %v5029_v60, %v4920_v39 }
 0x1d3   : > { %v2618_v21 = vpop.f32.mrf.mxu0  ;;  %v2851_v43 = vsel %vm2786_vm9, %v2753_v20, %v2819_v6  ;;  %vm2791_vm10 = vcmp.gt.f32.partialorder %v2758_v7, 0.0  ;;  %v2824_v59 = vmul.f32 %v5120_v34, %v2758_v7  ;;  %v3630_v63 = vpop.f32.mrf.mxu1  ;;  %v1965_v40 = vadd.f32 %v5033_v1, %v4923_v50 }
 0x1d4   : > { %2883 = vst [vmem:[%s5139_s8 + $0x8] sm:$0xff] %v2851_v43  ;;  %vm2789_vm11 = vcmp.gt.f32.partialorder %v2756_v9, 0.0  ;;  %v2822_v4 = vmul.f32 %v5120_v34, %v2756_v9  ;;  %v2759_v44 = vadd.f32 %v5113_v56, %v2720_v15  ;;  %v2718_v14 = vadd.f32 %v2605_v45, %v2516_v25 }
 0x1d5   : > { %v3665_v54 = vpop.f32.mrf.mxu0  ;;  %v2856_v17 = vsel %vm2791_vm10, %v2758_v7, %v2824_v59  ;;  %v2521_v33 = vadd.f32 %v3630_v63, %v2319_v3  ;;  %v2416_v31 = vpop.f32.mrf.mxu1  ;;  %v2323_v48 = vadd.f32 %v5015_v57, %v1966_v29  ;;  %v1970_v18 = vadd.f32 %v5037_v55, %v4926_v23  ;;  %v5449_v29 = vld [vmem:[#allocation8_spill] sm:$0xff] }
 0x1d6   : > { %2888 = vst [vmem:[%s5139_s8 + $0x30] sm:$0xff] %v2856_v17  ;;  %v2854_v53 = vsel %vm2789_vm11, %v2756_v9, %v2822_v4  ;;  %vm2792_vm12 = vcmp.gt.f32.partialorder %v2759_v44, 0.0  ;;  %v2825_v38 = vmul.f32 %v5120_v34, %v2759_v44  ;;  %v2757_v2 = vadd.f32 %v5113_v56, %v2718_v14  ;;  %v5447_v4 = vld [vmem:[#allocation7_spill] sm:$0xff] }
 0x1d7   : > { %v2621_v19 = vpop.f32.mrf.mxu0  ;;  %2886 = vst [vmem:[%s5139_s8 + $0x20] sm:$0xff] %v2854_v53  ;;  %v2723_v62 = vadd.f32 %v3664_v24, %v2521_v33  ;;  %v2519_v27 = vadd.f32 %v2416_v31, %v2317_v11  ;;  %v3631_v16 = vpop.f32.mrf.mxu1  ;;  %v2321_v42 = vadd.f32 %v5019_v12, %v1964_v36  ;;  %v2324_v41 = vadd.f32 %v5023_v13, %v1967_v46 }
 0x1d8   : > { %v2857_v37 = vsel %vm2792_vm12, %v2759_v44, %v2825_v38  ;;  %vm2790_vm13 = vcmp.gt.f32.partialorder %v2757_v2, 0.0  ;;  %v2823_v5 = vmul.f32 %v5120_v34, %v2757_v2  ;;  %v2522_v45 = vadd.f32 %v3631_v16, %v2320_v47  ;;  %v5445_v47 = vld [vmem:[#allocation6_spill] sm:$0xff]  ;;  %v5448_v44 = vld [vmem:[#allocation25_spill] sm:$0xff] }
 0x1d9   : > { %v3668_v10 = vpop.f32.mrf.mxu0  ;;  %2889 = vst [vmem:[%s5139_s8 + $0x38] sm:$0xff] %v2857_v37  ;;  %v2762_v39 = vadd.f32 %v5113_v56, %v2723_v62  ;;  %v2721_v50 = vadd.f32 %v2618_v21, %v2519_v27  ;;  %v2419_v1 = vpop.f32.mrf.mxu1  ;;  %v2322_v24 = vadd.f32 %v5027_v35, %v1965_v40  ;;  %v2327_v49 = vadd.f32 %v5031_v0, %v1970_v18  ;;  %v5446_v0 = vld [vmem:[#allocation23_spill] sm:$0xff]  ;;  %v5453_v18 = vld [vmem:[#allocation22_spill] sm:$0xff] }
 0x1da   : > { %v2855_v52 = vsel %vm2790_vm13, %v2757_v2, %v2823_v5  ;;  %v2724_v28 = vadd.f32 %v3665_v54, %v2522_v45  ;;  %v2520_v20 = vadd.f32 %v2419_v1, %v2318_v26  ;;  %v1968_v21 = vadd.f32 %v5041_v51, %v4929_v32  ;;  %v5450_v32 = vld [vmem:[#allocation27_spill] sm:$0xff]  ;;  %v5451_v2 = vld [vmem:[#allocation20_spill] sm:$0xff] }
 0x1db   : > { %v2634_v60 = vpop.f32.mrf.mxu0  ;;  %2887 = vst [vmem:[%s5139_s8 + $0x28] sm:$0xff] %v2855_v52  ;;  %vm2795_vm14 = vcmp.gt.f32.partialorder %v2762_v39, 0.0  ;;  %v2828_v57 = vmul.f32 %v5120_v34, %v2762_v39  ;;  %v2760_v23 = vadd.f32 %v5113_v56, %v2721_v50  ;;  %v3634_v55 = vpop.f32.mrf.mxu1  ;;  %v1971_v9 = vadd.f32 %v5446_v0, %v5445_v47  ;;  %v5454_v52 = vld [vmem:[#allocation24_spill] sm:$0xff] }
 0x1dc   : > { %v2763_v3 = vadd.f32 %v5113_v56, %v2724_v28  ;;  %v2722_v58 = vadd.f32 %v2621_v19, %v2520_v20  ;;  %v2525_v12 = vadd.f32 %v3634_v55, %v2323_v48  ;;  %v1969_v14 = vadd.f32 %v5448_v44, %v5447_v4  ;;  %v5456_v55 = vld [vmem:[#allocation29_spill] sm:$0xff]  ;;  %v5463_v4 = vld [vmem:[#allocation35_spill] sm:$0xff] }
 0x1dd   : > { %v3669_v61 = vpop.f32.mrf.mxu0  ;;  %v2860_v8 = vsel %vm2795_vm14, %v2762_v39, %v2828_v57  ;;  %vm2793_vm15 = vcmp.gt.f32.partialorder %v2760_v23, 0.0  ;;  %v2826_v13 = vmul.f32 %v5120_v34, %v2760_v23  ;;  %v2432_v11 = vpop.f32.mrf.mxu1  ;;  %v1974_v51 = vadd.f32 %v5450_v32, %v5449_v29 }
 0x1de   : > { %2892 = vst [vmem:[%s5139_s8 + $0x50] sm:$0xff] %v2860_v8  ;;  %vm2796_vm0 = vcmp.gt.f32.partialorder %v2763_v3, 0.0  ;;  %v2829_v7 = vmul.f32 %v5120_v34, %v2763_v3  ;;  %v2761_v35 = vadd.f32 %v5113_v56, %v2722_v58  ;;  %v2727_v30 = vadd.f32 %v3668_v10, %v2525_v12  ;;  %v5452_v10 = vld [vmem:[#allocation21_spill] sm:$0xff] }
 0x1df   : > { %v2637_v6 = vpop.f32.mrf.mxu0  ;;  %v2858_v15 = vsel %vm2793_vm15, %v2760_v23, %v2826_v13  ;;  %v2523_v25 = vadd.f32 %v2432_v11, %v2321_v42  ;;  %v3635_v26 = vpop.f32.mrf.mxu1  ;;  %v2325_v46 = vadd.f32 %v5451_v2, %v1968_v21  ;;  %v2328_v37 = vadd.f32 %v5452_v10, %v1971_v9  ;;  %v5455_v23 = vld [vmem:[#allocation9_spill] sm:$0xff] }
 0x1e0   : > { %2890 = vst [vmem:[%s5139_s8 + $0x40] sm:$0xff] %v2858_v15  ;;  %v2861_v59 = vsel %vm2796_vm0, %v2763_v3, %v2829_v7  ;;  %vm2794_vm1 = vcmp.gt.f32.partialorder %v2761_v35, 0.0  ;;  %v2827_v63 = vmul.f32 %v5120_v34, %v2761_v35  ;;  %v2766_v54 = vadd.f32 %v5113_v56, %v2727_v30  ;;  %v5457_v11 = vld [vmem:[#allocation13_spill] sm:$0xff] }
 0x1e1   : > { %v3672_v43 = vpop.f32.mrf.mxu0  ;;  %2893 = vst [vmem:[%s5139_s8 + $0x58] sm:$0xff] %v2861_v59  ;;  %v2725_v36 = vadd.f32 %v2634_v60, %v2523_v25  ;;  %v2526_v17 = vadd.f32 %v3635_v26, %v2324_v41  ;;  %v2435_v33 = vpop.f32.mrf.mxu1  ;;  %v2326_v39 = vadd.f32 %v5453_v18, %v1969_v14  ;;  %v2331_v28 = vadd.f32 %v5454_v52, %v1974_v51  ;;  %v5460_v30 = vld [vmem:[#allocation33_spill] sm:$0xff]  ;;  %v5461_v59 = vld [vmem:[#allocation26_spill] sm:$0xff] }
 0x1e2   : > { %v2859_v19 = vsel %vm2794_vm1, %v2761_v35, %v2827_v63  ;;  %vm2799_vm2 = vcmp.gt.f32.partialorder %v2766_v54, 0.0  ;;  %v2832_v53 = vmul.f32 %v5120_v34, %v2766_v54  ;;  %v2524_v38 = vadd.f32 %v2435_v33, %v2322_v24  ;;  %v5459_v35 = vld [vmem:[#allocation10_spill] sm:$0xff] }
 0x1e3   : > { %v2650_v31 = vpop.f32.mrf.mxu0  ;;  %2891 = vst [vmem:[%s5139_s8 + $0x48] sm:$0xff] %v2859_v19  ;;  %v2764_v40 = vadd.f32 %v5113_v56, %v2725_v36  ;;  %v2728_v62 = vadd.f32 %v3669_v61, %v2526_v17  ;;  %v3638_v27 = vpop.f32.mrf.mxu1  ;;  %v1972_v61 = vadd.f32 %v5456_v55, %v5455_v23  ;;  %v1973_v21 = vadd.f32 %v5460_v30, %v5459_v35 }
 0x1e4   : > { %v2864_v5 = vsel %vm2799_vm2, %v2766_v54, %v2832_v53  ;;  %v2726_v45 = vadd.f32 %v2637_v6, %v2524_v38  ;;  %v2529_v48 = vadd.f32 %v3638_v27, %v2327_v49  ;;  %v5458_v6 = vld [vmem:[#allocation31_spill] sm:$0xff] }
 0x1e5   : > { %v3673_v16 = vpop.f32.mrf.mxu0  ;;  %2896 = vst [vmem:[%s5139_s8 + $0x70] sm:$0xff] %v2864_v5  ;;  %vm2797_vm3 = vcmp.gt.f32.partialorder %v2764_v40, 0.0  ;;  %v2830_v50 = vmul.f32 %v5120_v34, %v2764_v40  ;;  %v2767_v1 = vadd.f32 %v5113_v56, %v2728_v62  ;;  %v2448_v60 = vpop.f32.mrf.mxu1  ;;  %v1975_v7 = vadd.f32 %v5458_v6, %v5457_v11  ;;  %v5462_v54 = vld [vmem:[#allocation11_spill] sm:$0xff]  ;;  %v5467_v5 = vld [vmem:[#allocation37_spill] sm:$0xff] }
 0x1e6   : > { %v2765_v20 = vadd.f32 %v5113_v56, %v2726_v45  ;;  %v2731_v41 = vadd.f32 %v3672_v43, %v2529_v48  ;;  %v2527_v57 = vadd.f32 %v2448_v60, %v2325_v46  ;;  %v2329_v63 = vadd.f32 %v5461_v59, %v1972_v61  ;;  %v5473_v11 = vld [vmem:[#allocation41_spill] sm:$0xff] }
 0x1e7   : > { %v2653_v42 = vpop.f32.mrf.mxu0  ;;  %v2862_v24 = vsel %vm2797_vm3, %v2764_v40, %v2830_v50  ;;  %vm2800_vm4 = vcmp.gt.f32.partialorder %v2767_v1, 0.0  ;;  %v2833_v3 = vmul.f32 %v5120_v34, %v2767_v1  ;;  %v3639_v58 = vpop.f32.mrf.mxu1  ;;  %v1978_v44 = vadd.f32 %v5463_v4, %v5462_v54  ;;  %v5465_v40 = vld [vmem:[#allocation30_spill] sm:$0xff] }
 0x1e8   : > { %2894 = vst [vmem:[%s5139_s8 + $0x60] sm:$0xff] %v2862_v24  ;;  %vm2798_vm5 = vcmp.gt.f32.partialorder %v2765_v20, 0.0  ;;  %v2831_v49 = vmul.f32 %v5120_v34, %v2765_v20  ;;  %v2770_v8 = vadd.f32 %v5113_v56, %v2731_v41  ;;  %v2729_v13 = vadd.f32 %v2650_v31, %v2527_v57  ;;  %v5464_v31 = vld [vmem:[#allocation28_spill] sm:$0xff]  ;;  %v5470_v41 = vld [vmem:[#allocation39_spill] sm:$0xff] }
 0x1e9   : > { %v3676_v12 = vpop.f32.mrf.mxu0  ;;  %v2865_v47 = vsel %vm2800_vm4, %v2767_v1, %v2833_v3  ;;  %v2530_v0 = vadd.f32 %v3639_v58, %v2328_v37  ;;  %v2451_v9 = vpop.f32.mrf.mxu1  ;;  %v2332_v19 = vadd.f32 %v5464_v31, %v1975_v7  ;;  %v2330_v62 = vadd.f32 %v5465_v40, %v1973_v21  ;;  %v5466_v37 = vld [vmem:[#allocation15_spill] sm:$0xff]  ;;  %v5468_v1 = vld [vmem:[#allocation32_spill] sm:$0xff] }
 0x1ea   : > { %2897 = vst [vmem:[%s5139_s8 + $0x78] sm:$0xff] %v2865_v47  ;;  %v2863_v25 = vsel %vm2798_vm5, %v2765_v20, %v2831_v49  ;;  %vm2803_vm6 = vcmp.gt.f32.partialorder %v2770_v8, 0.0  ;;  %v2836_v26 = vmul.f32 %v5120_v34, %v2770_v8  ;;  %v2768_v43 = vadd.f32 %v5113_v56, %v2729_v13  ;;  %v5469_v20 = vld [vmem:[#allocation12_spill] sm:$0xff]  ;;  %v5471_v49 = vld [vmem:[#allocation34_spill] sm:$0xff] }
 0x1eb   : > { %v2666_v15 = vpop.f32.mrf.mxu0  ;;  %2895 = vst [vmem:[%s5139_s8 + $0x68] sm:$0xff] %v2863_v25  ;;  %v2732_v14 = vadd.f32 %v3673_v16, %v2530_v0  ;;  %v2528_v29 = vadd.f32 %v2451_v9, %v2326_v39  ;;  %v3642_v32 = vpop.f32.mrf.mxu1  ;;  %v1976_v45 = vadd.f32 %v5467_v5, %v5466_v37  ;;  %v2335_v60 = vadd.f32 %v5468_v1, %v1978_v44  ;;  %v5472_v13 = vld [vmem:[#allocation14_spill] sm:$0xff]  ;;  %v5482_v1 = vld [vmem:[#allocation19_spill] sm:$0xff] }
 0x1ec   : > { %v2868_v36 = vsel %vm2803_vm6, %v2770_v8, %v2836_v26  ;;  %vm2801_vm7 = vcmp.gt.f32.partialorder %v2768_v43, 0.0  ;;  %v2834_v17 = vmul.f32 %v5120_v34, %v2768_v43  ;;  %v2533_v33 = vadd.f32 %v3642_v32, %v2331_v28  ;;  %v5475_v26 = vld [vmem:[#allocation16_spill] sm:$0xff] }
 0x1ed   : > { %v3677_v51 = vpop.f32.mrf.mxu0  ;;  %2900 = vst [vmem:[%s5139_s8 + $0x90] sm:$0xff] %v2868_v36  ;;  %v2771_v53 = vadd.f32 %v5113_v56, %v2732_v14  ;;  %v2730_v38 = vadd.f32 %v2653_v42, %v2528_v29  ;;  %v2464_v2 = vpop.f32.mrf.mxu1  ;;  %v1979_v57 = vadd.f32 %v5470_v41, %v5469_v20  ;;  %v2333_v8 = vadd.f32 %v5471_v49, %v1976_v45  ;;  %v5481_v45 = vld [vmem:[#allocation40_spill] sm:$0xff] }
 0x1ee   : > { %v2866_v27 = vsel %vm2801_vm7, %v2768_v43, %v2834_v17  ;;  %v2735_v16 = vadd.f32 %v3676_v12, %v2533_v33  ;;  %v2531_v10 = vadd.f32 %v2464_v2, %v2329_v63  ;;  %v1977_v6 = vadd.f32 %v5473_v11, %v5472_v13  ;;  %v5476_v43 = vld [vmem:[#allocation43_spill] sm:$0xff] }
 0x1ef   : > { %v2669_v46 = vpop.f32.mrf.mxu0  ;;  %2898 = vst [vmem:[%s5139_s8 + $0x80] sm:$0xff] %v2866_v27  ;;  %vm2804_vm8 = vcmp.gt.f32.partialorder %v2771_v53, 0.0  ;;  %v2837_v48 = vmul.f32 %v5120_v34, %v2771_v53  ;;  %v2769_v18 = vadd.f32 %v5113_v56, %v2730_v38  ;;  %v3643_v39 = vpop.f32.mrf.mxu1  ;;  %v1982_v59 = vadd.f32 %v5476_v43, %v5475_v26  ;;  %v5479_v38 = vld [vmem:[#allocation45_spill] sm:$0xff]  ;;  %v5480_v27 = vld [vmem:[#allocation18_spill] sm:$0xff] }
 0x1f0   : > { %v2774_v42 = vadd.f32 %v5113_v56, %v2735_v16  ;;  %v2733_v52 = vadd.f32 %v2666_v15, %v2531_v10  ;;  %v2534_v28 = vadd.f32 %v3643_v39, %v2332_v19  ;;  %v5474_v15 = vld [vmem:[#allocation36_spill] sm:$0xff]  ;;  %v1983_v16 = vadd.f32 %v5094_v22, %v5480_v27 }
 0x1f1   : > { %v3680_v50 = vpop.f32.mrf.mxu0  ;;  %v2869_v23 = vsel %vm2804_vm8, %v2771_v53, %v2837_v48  ;;  %vm2802_vm9 = vcmp.gt.f32.partialorder %v2769_v18, 0.0  ;;  %v2835_v55 = vmul.f32 %v5120_v34, %v2769_v18  ;;  %v2467_v61 = vpop.f32.mrf.mxu1  ;;  %v2336_v25 = vadd.f32 %v5474_v15, %v1979_v57  ;;  %v5478_v53 = vld [vmem:[#allocation17_spill] sm:$0xff] }
 0x1f2   : > { %2901 = vst [vmem:[%s5139_s8 + $0x98] sm:$0xff] %v2869_v23  ;;  %vm2807_vm10 = vcmp.gt.f32.partialorder %v2774_v42, 0.0  ;;  %v2840_v3 = vmul.f32 %v5120_v34, %v2774_v42  ;;  %v2772_v58 = vadd.f32 %v5113_v56, %v2733_v52  ;;  %v2736_v12 = vadd.f32 %v3677_v51, %v2534_v28  ;;  %v5477_v51 = vld [vmem:[#allocation38_spill] sm:$0xff] }
 0x1f3   : > { %v2682_v24 = vpop.f32.mrf.mxu0  ;;  %v2867_v7 = vsel %vm2802_vm9, %v2769_v18, %v2835_v55  ;;  %v2532_v35 = vadd.f32 %v2467_v61, %v2330_v62  ;;  %v3646_v30 = vpop.f32.mrf.mxu1  ;;  %v2334_v36 = vadd.f32 %v5477_v51, %v1977_v6  ;;  %v1980_v2 = vadd.f32 %v5479_v38, %v5478_v53  ;;  %v5484_v55 = vld [vmem:[#allocation42_spill] sm:$0xff] }
 0x1f4   : > { %2899 = vst [vmem:[%s5139_s8 + $0x88] sm:$0xff] %v2867_v7  ;;  %v2872_v47 = vsel %vm2807_vm10, %v2774_v42, %v2840_v3  ;;  %vm2805_vm11 = vcmp.gt.f32.partialorder %v2772_v58, 0.0  ;;  %v2838_v0 = vmul.f32 %v5120_v34, %v2772_v58  ;;  %v2775_v9 = vadd.f32 %v5113_v56, %v2736_v12  ;;  %v5486_v6 = vld [vmem:[#allocation46_spill] sm:$0xff] }
 0x1f5   : > { %v3681_v21 = vpop.f32.mrf.mxu0  ;;  %2904 = vst [vmem:[%s5139_s8 + $0xb0] sm:$0xff] %v2872_v47  ;;  %v2734_v63 = vadd.f32 %v2669_v46, %v2532_v35  ;;  %v2537_v54 = vadd.f32 %v3646_v30, %v2335_v60  ;;  %v2480_v4 = vpop.f32.mrf.mxu1  ;;  %v2339_v48 = vadd.f32 %v5481_v45, %v1982_v59  ;;  %v5483_v60 = vld [vmem:[#allocation47_spill] sm:$0xff]  ;;  %v2337_v61 = vadd.f32 %v5484_v55, %v1980_v2 }
 0x1f6   : > { %v2870_v14 = vsel %vm2805_vm11, %v2772_v58, %v2838_v0  ;;  %vm2808_vm12 = vcmp.gt.f32.partialorder %v2775_v9, 0.0  ;;  %v2841_v29 = vmul.f32 %v5120_v34, %v2775_v9  ;;  %v2535_v32 = vadd.f32 %v2480_v4, %v2333_v8 }
 0x1f7   : > { %v2685_v44 = vpop.f32.mrf.mxu0  ;;  %2902 = vst [vmem:[%s5139_s8 + $0xa0] sm:$0xff] %v2870_v14  ;;  %v2773_v17 = vadd.f32 %v5113_v56, %v2734_v63  ;;  %v2739_v33 = vadd.f32 %v3680_v50, %v2537_v54  ;;  %v3647_v31 = vpop.f32.mrf.mxu1  ;;  %v1981_v42 = vadd.f32 %v5483_v60, %v5482_v1 }
 0x1f8   : > { %v2873_v46 = vsel %vm2808_vm12, %v2775_v9, %v2841_v29  ;;  %v2737_v40 = vadd.f32 %v2682_v24, %v2535_v32  ;;  %v2538_v62 = vadd.f32 %v3647_v31, %v2336_v25  ;;  %v5485_v24 = vld [vmem:[#allocation44_spill] sm:$0xff] }
 0x1f9   : > { %v3684_v19 = vpop.f32.mrf.mxu0  ;;  %2905 = vst [vmem:[%s5139_s8 + $0xb8] sm:$0xff] %v2873_v46  ;;  %vm2806_vm13 = vcmp.gt.f32.partialorder %v2773_v17, 0.0  ;;  %v2839_v10 = vmul.f32 %v5120_v34, %v2773_v17  ;;  %v2778_v37 = vadd.f32 %v5113_v56, %v2739_v33  ;;  %v2483_v5 = vpop.f32.mrf.mxu1  ;;  %v2340_v3 = vadd.f32 %v5485_v24, %v1983_v16 }
 0x1fa   : > { %v2776_v18 = vadd.f32 %v5113_v56, %v2737_v40  ;;  %v2740_v39 = vadd.f32 %v3681_v21, %v2538_v62  ;;  %v2536_v50 = vadd.f32 %v2483_v5, %v2334_v36  ;;  %v2338_v7 = vadd.f32 %v5486_v6, %v1981_v42 }
 0x1fb   : > { %v2871_v52 = vsel %vm2806_vm13, %v2773_v17, %v2839_v10  ;;  %vm2811_vm14 = vcmp.gt.f32.partialorder %v2778_v37, 0.0  ;;  %v2844_v22 = vmul.f32 %v5120_v34, %v2778_v37  ;;  %v3650_v28 = vpop.f32.mrf.mxu1  ;;  %v2698_v20 = vpop.f32.mrf.mxu0 }
 0x1fc   : > { %2903 = vst [vmem:[%s5139_s8 + $0xa8] sm:$0xff] %v2871_v52  ;;  %vm2809_vm15 = vcmp.gt.f32.partialorder %v2776_v18, 0.0  ;;  %v2842_v41 = vmul.f32 %v5120_v34, %v2776_v18  ;;  %v2779_v57 = vadd.f32 %v5113_v56, %v2740_v39  ;;  %v2738_v23 = vadd.f32 %v2685_v44, %v2536_v50 }
 0x1fd   : > { %v2876_v58 = vsel %vm2811_vm14, %v2778_v37, %v2844_v22  ;;  %v2541_v12 = vadd.f32 %v3650_v28, %v2339_v48  ;;  %v2496_v49 = vpop.f32.mrf.mxu1  ;;  %v3685_v47 = vpop.f32.mrf.mxu0 }
 0x1fe   : > { %2908 = vst [vmem:[%s5139_s8 + $0xd0] sm:$0xff] %v2876_v58  ;;  %v2874_v8 = vsel %vm2809_vm15, %v2776_v18, %v2842_v41  ;;  %vm2812_vm0 = vcmp.gt.f32.partialorder %v2779_v57, 0.0  ;;  %v2845_v13 = vmul.f32 %v5120_v34, %v2779_v57  ;;  %v2777_v11 = vadd.f32 %v5113_v56, %v2738_v23 }
 0x1ff   : > { %2906 = vst [vmem:[%s5139_s8 + $0xc0] sm:$0xff] %v2874_v8  ;;  %v2743_v35 = vadd.f32 %v3684_v19, %v2541_v12  ;;  %v2539_v30 = vadd.f32 %v2496_v49, %v2337_v61  ;;  %v3651_v21 = vpop.f32.mrf.mxu1  ;;  %v2701_v14 = vpop.f32.mrf.mxu0 }
 0x200   : > { %v2877_v0 = vsel %vm2812_vm0, %v2779_v57, %v2845_v13  ;;  %vm2810_vm1 = vcmp.gt.f32.partialorder %v2777_v11, 0.0  ;;  %v2843_v9 = vmul.f32 %v5120_v34, %v2777_v11  ;;  %v2542_v15 = vadd.f32 %v3651_v21, %v2340_v3 }
 0x201   : > { %2909 = vst [vmem:[%s5139_s8 + $0xd8] sm:$0xff] %v2877_v0  ;;  %v2782_v25 = vadd.f32 %v5113_v56, %v2743_v35  ;;  %v2741_v26 = vadd.f32 %v2698_v20, %v2539_v30  ;;  %v2499_v43 = vpop.f32.mrf.mxu1 }
 0x202   : > { %v2875_v59 = vsel %vm2810_vm1, %v2777_v11, %v2843_v9  ;;  %v2744_v63 = vadd.f32 %v3685_v47, %v2542_v15  ;;  %v2540_v54 = vadd.f32 %v2499_v43, %v2338_v7 }
 0x203   : > { %2907 = vst [vmem:[%s5139_s8 + $0xc8] sm:$0xff] %v2875_v59  ;;  %vm2815_vm2 = vcmp.gt.f32.partialorder %v2782_v25, 0.0  ;;  %v2848_v4 = vmul.f32 %v5120_v34, %v2782_v25  ;;  %v2780_v44 = vadd.f32 %v5113_v56, %v2741_v26 }
 0x204   : > { %v2783_v29 = vadd.f32 %v5113_v56, %v2744_v63  ;;  %v2742_v32 = vadd.f32 %v2701_v14, %v2540_v54 }
 0x205   : > { %v2880_v51 = vsel %vm2815_vm2, %v2782_v25, %v2848_v4  ;;  %vm2813_vm3 = vcmp.gt.f32.partialorder %v2780_v44, 0.0  ;;  %v2846_v36 = vmul.f32 %v5120_v34, %v2780_v44 }
 0x206   : > { %2912 = vst [vmem:[%s5139_s8 + $0xf0] sm:$0xff] %v2880_v51  ;;  %vm2816_vm4 = vcmp.gt.f32.partialorder %v2783_v29, 0.0  ;;  %v2849_v17 = vmul.f32 %v5120_v34, %v2783_v29  ;;  %v2781_v33 = vadd.f32 %v5113_v56, %v2742_v32 }
 0x207   : > { %v2878_v31 = vsel %vm2813_vm3, %v2780_v44, %v2846_v36 }
 0x208   : > { %2910 = vst [vmem:[%s5139_s8 + $0xe0] sm:$0xff] %v2878_v31  ;;  %v2881_v19 = vsel %vm2816_vm4, %v2783_v29, %v2849_v17  ;;  %vm2814_vm5 = vcmp.gt.f32.partialorder %v2781_v33, 0.0  ;;  %v2847_v53 = vmul.f32 %v5120_v34, %v2781_v33 }
 0x209   : > { %2913 = vst [vmem:[%s5139_s8 + $0xf8] sm:$0xff] %v2881_v19 }
 0x20a   : > { %v2879_v38 = vsel %vm2814_vm5, %v2781_v33, %v2847_v53 }
 0x20b   : > { %2911 = vst [vmem:[%s5139_s8 + $0xe8] sm:$0xff] %v2879_v38 }
 0x20c   : > { %3806 = shalt.err (!%p3803_p5)
}
 0x20d   : > { %s3807_s18 = scalar_lea.hbm %s5302_s13, 4096  ;;  %s3811_s26 = scalar_lea.hbm %s5360_s5, 8192 }
 0x20e   : > { %p3808_p6 = scmp.ne.s32.totalorder %s5302_s13, %s3807_s18  ;;  %p3812_p10 = scmp.lt.s32.totalorder %s5302_s13, %s5360_s5 }
 0x20f   : > { %p3813_p11 = scmp.lt.s32.totalorder %s3811_s26, %s3807_s18 }
 0x210   : > { %p3809_p7 = pnand %p3808_p6, %p3947_p4 }
 0x211   : > { %p3814_p12 = por %p3813_p11, %p3812_p10 }
 0x212   : > { %p3810_p9 = pneg %p3809_p7 }
 0x214   : > { %p3815_p13 = pnand %p3814_p12, %p3810_p9 }
 0x216   : > { %3818 = shalt.err (!%p3815_p13)
}
 0x217   : > { %s3872_s8 = smov 128   ;;  %s3873_s9 = smov 8  }
 0x218   : > { %3700 = dma.vmem_to_hbm [thread:$0]  (%p3947_p4), %s5304_s10, 4096, %s5302_s13, %s5310_s23, %s3872_s8, %s3872_s8, %s3873_s9  }
 0x219 PF: > { %p3706_p0 = scmp.ge.s32.totalorder %s3869_s25, 2  ;;  %s2945_s11 = sand.u32 1, %s3849_s20  }
 0x21a   : > { %s2946_s12 = scalar_lea.sflag [#allocation4], %s2945_s11 }
 0x21b   : > { %p3703_p1 = pnand %p3706_p0, %p3954_p8 }
 0x21d   : > { %p3704_p2 = pneg %p3703_p1 }
 0x21f   : > { %3844 = dma.done.wait (%p3704_p2), %s2946_s12, 4096  }
 0x220   : > { %3846 = vsyncadd (%p3704_p2), %s2946_s12, 4294963200  ;;  %s19_s25 = sadd.s32 1, %s3869_s25   ;;  %s5487_s20 = smov %s3853_s21 }
 0x221   : > { %p16_p3 = scmp.ge.s32.totalorder %s19_s25, 4   ;;  %s5488_s21 = smov %s3857_s22 }
 0x222   : > { %s5489_s22 = smov %s3960_s7  ;;  %s5490_s23 = smov %s3865_s24 }
 0x223   : > { %s5491_s24 = smov %s5493_s27  ;;  %18 = sbr.rel (!%p16_p3) target bundleno = 6 (0x6), region = 86 }
 0x228   :  { %2951 = vsyncpa [#allocation4], 1 }
 0x229   :  { %2953 = vsyncpa [#allocation4 + $0x1], 1 }

</bundles_post_ra>
